<compile_context>
chip_gen: v6e
topology: v6e:2x2x1
jax: 0.10.0
libtpu: 0.0.40
codegen_flags: <defaults>
</compile_context>

<pallas_src>
import functools

import numpy as np
import jax
import jax.numpy as jnp
from jax.experimental import pallas as pl
from jax.experimental.pallas import tpu as pltpu


# ----------------------------- kernel ----------------------------------------

def _stn_fused_kernel(x_ref, w1_ref, b1_ref, w2_ref, b2_ref, w3_ref, b3_ref,
                      wf1_ref, bf1_ref, wf2_ref, bf2_ref, wf3_ref, bf3_ref,
                      iden_ref, out_ref, pooled_ref, *, n_total):
    """Point MLP + streaming max-pool + FC head, fused.

    x_ref:      (bt, K, nt) float32 block of the (B, K, N) input (no HBM
                transpose in the wrapper; the tile is transposed in-kernel).
    w*_ref:     bf16 weights (BN folded), b*_ref: f32 biases (1, C).
    out_ref:    (bt, 1, out_pad) float32, resident across the point-tile axis,
                written only on the last point tile.
    pooled_ref: (bt, 1024) float32 VMEM scratch (running max over points).
    """
    n_idx = pl.program_id(1)

    @pl.when(n_idx == 0)
    def _():
        # 0.0 (not -inf): post-ReLU activations are >= 0, and zero-init keeps
        # tail-tile masking safe.
        pooled_ref[...] = jnp.zeros_like(pooled_ref)

    bt, k_in, nt = x_ref.shape

    # (bt, K, nt) -> (bt*nt, K): cheap XLU transpose of the small tile; this is
    # what replaces the wrapper-level HBM transpose of the whole input.
    xt = jnp.swapaxes(x_ref[...], 1, 2).reshape(bt * nt, k_in)
    xt = xt.astype(jnp.bfloat16)

    # conv1 + bn1 + relu  (batched over bt*nt rows for MXU fill)
    h = jnp.dot(xt, w1_ref[...], preferred_element_type=jnp.float32) + b1_ref[...]
    h = jnp.maximum(h, 0.0)                                        # (bt*nt, 64)
    # conv2 + bn2 + relu
    h = jnp.dot(h.astype(jnp.bfloat16), w2_ref[...],
                preferred_element_type=jnp.float32) + b2_ref[...]
    h2 = jnp.maximum(h, 0.0)                                       # (bt*nt, 128)

    # conv3 + bn3 + relu + running max, fused per batch element so the peak
    # f32 temporary is only (nt, 1024).
    needs_mask = (n_total % nt) != 0
    if needs_mask:
        row = jax.lax.broadcasted_iota(jnp.int32, (nt, 1), 0)
        valid = (n_idx * nt + row) < n_total                       # (nt, 1) bool

    maxes = []
    for bb in range(bt):                                           # bt <= 8, static
        hb = h2[bb * nt:(bb + 1) * nt]                             # (nt, 128)
        hb = jnp.dot(hb.astype(jnp.bfloat16), w3_ref[...],
                     preferred_element_type=jnp.float32) + b3_ref[...]
        hb = jnp.maximum(hb, 0.0)                                  # (nt, 1024)
        if needs_mask:
            hb = jnp.where(valid, hb, 0.0)                         # zero padded rows
        maxes.append(jnp.max(hb, axis=0, keepdims=True))           # (1, 1024)
    blk_max = jnp.concatenate(maxes, axis=0) if bt > 1 else maxes[0]
    pooled_ref[...] = jnp.maximum(pooled_ref[...], blk_max)

    # FC head on the last point tile (fused; no second pallas_call, no pooled
    # HBM round trip).
    @pl.when(n_idx == pl.num_programs(1) - 1)
    def _():
        p = pooled_ref[...].astype(jnp.bfloat16)                   # (bt, 1024)
        f = jnp.dot(p, wf1_ref[...],
                    preferred_element_type=jnp.float32) + bf1_ref[...]
        f = jnp.maximum(f, 0.0)                                    # (bt, 512)
        f = jnp.dot(f.astype(jnp.bfloat16), wf2_ref[...],
                    preferred_element_type=jnp.float32) + bf2_ref[...]
        f = jnp.maximum(f, 0.0)                                    # (bt, 256)
        o = jnp.dot(f.astype(jnp.bfloat16), wf3_ref[...],
                    preferred_element_type=jnp.float32)
        res = o + bf3_ref[...] + iden_ref[...]                     # (bt, out_pad)
        out_ref[...] = res[:, None, :]


# ----------------------------- wrapper ----------------------------------------

def _const_spec(shape):
    """Full-array block whose block index never changes across the grid."""
    nd = len(shape)
    # TODO(synk): pipeline_mode=pl.Buffered(1) would single-buffer these
    # constants (small VMEM saving); omitted for portability.
    return pl.BlockSpec(shape, lambda *_, _nd=nd: (0,) * _nd)


def _largest_divisor_leq(n, cap):
    for d in range(max(1, min(n, cap)), 0, -1):
        if n % d == 0:
            return d
    return 1


def stnkd_forward(x_bkn, params, k):
    """x_bkn: (B, K, N) float32 in the PyTorch NCW layout. Returns (B, K, K)."""
    B, K, N = x_bkn.shape
    assert K == k
    (w1, b1, w2, b2, w3, b3, wf1, bf1, wf2, bf2, wf3, bf3, iden) = params

    # Pad the fc3 output dimension to a multiple of 128 lanes so the final
    # store is never a masked partial store (matters for small k, e.g. k=3).
    kk = k * k
    out_pad = ((kk + 127) // 128) * 128
    if out_pad != kk:
        wf3 = jnp.pad(wf3, ((0, 0), (0, out_pad - kk)))
        bf3 = jnp.pad(bf3, ((0, 0), (0, out_pad - kk)))
        iden = jnp.pad(iden, ((0, 0), (0, out_pad - kk)))

    # Batch tile: divisor of B, at most 8, and <= B//2 whenever B >= 2 so the
    # parallel grid axis has >= 2 steps (keeps v7x's second TensorCore busy).
    bt_cap = min(8, max(1, B // 2)) if B >= 2 else 1
    bt = _largest_divisor_leq(B, bt_cap)

    # Point tile: fixed, lane-aligned (multiple of 128) or the full axis;
    # grid uses cdiv + in-kernel masking, so VMEM stays bounded for any N.
    if N >= 256:
        nt = 512 if (bt * 256 < 512 and N >= 512) else 256
    else:
        nt = N
    n_steps = pl.cdiv(N, nt)

    kernel = functools.partial(_stn_fused_kernel, n_total=N)

    in_specs = [pl.BlockSpec((bt, K, nt), lambda b, n: (b, 0, n))]
    in_specs += [_const_spec(p.shape)
                 for p in (w1, b1, w2, b2, w3, b3,
                           wf1, bf1, wf2, bf2, wf3, bf3, iden)]

    out = pl.pallas_call(
        kernel,
        out_shape=jax.ShapeDtypeStruct((B, 1, out_pad), jnp.float32),
        grid_spec=pltpu.PrefetchScalarGridSpec(
            num_scalar_prefetch=0,
            grid=(B // bt, n_steps),
            in_specs=in_specs,
            out_specs=pl.BlockSpec((bt, 1, out_pad), lambda b, n: (b, 0, 0)),
            scratch_shapes=[pltpu.VMEM((bt, 1024), jnp.float32)],
        ),
        compiler_params=pltpu.CompilerParams(
            dimension_semantics=("parallel", "arbitrary"),
            vmem_limit_bytes=32 * 1024 * 1024),
    )(x_bkn, w1, b1, w2, b2, w3, b3, wf1, bf1, wf2, bf2, wf3, bf3, iden)

    out = out[:, 0, :kk] if out_pad != kk else out[:, 0, :]
    return out.reshape(B, k, k)


# ----------------------------- params / reference -----------------------------

def make_params(key, k):
    """Deterministic synthetic parameters; eval-mode BN folded into the linears.

    Linear weights are stored in bfloat16 (MXU-friendly); biases stay float32.
    """
    eps = 1e-5

    def lin(key, cin, cout, scale=0.05):
        kw, kb = jax.random.split(key)
        W = scale * jax.random.normal(kw, (cout, cin), jnp.float32)  # PyTorch (out, in)
        b = scale * jax.random.normal(kb, (cout,), jnp.float32)
        return W, b

    def bn(c, seed):
        gamma = 1.0 + 0.01 * jnp.arange(c, dtype=jnp.float32)
        beta = 0.01 * jnp.arange(c, dtype=jnp.float32) - 0.02 * seed
        rmean = 0.001 * jnp.arange(c, dtype=jnp.float32)
        rvar = 1.0 + 0.005 * jnp.arange(c, dtype=jnp.float32)
        scale = gamma / jnp.sqrt(rvar + eps)
        shift = beta - rmean * scale
        return scale, shift

    keys = jax.random.split(key, 6)
    W1, c1b = lin(keys[0], k, 64)
    W2, c2b = lin(keys[1], 64, 128)
    W3, c3b = lin(keys[2], 128, 1024)
    Wf1, f1b = lin(keys[3], 1024, 512)
    Wf2, f2b = lin(keys[4], 512, 256)
    Wf3, f3b = lin(keys[5], 256, k * k)

    s1, t1 = bn(64, 1)
    s2, t2 = bn(128, 2)
    s3, t3 = bn(1024, 3)
    s4, t4 = bn(512, 4)
    s5, t5 = bn(256, 5)

    def fold(W, b, scale, shift):
        # bn(x @ W.T + b) = x @ (W.T * scale) + (b * scale + shift)
        w_eff = (W.T * scale[None, :]).astype(jnp.bfloat16)           # (in, out) bf16
        b_eff = (b * scale + shift)[None, :].astype(jnp.float32)      # (1, out) f32
        return w_eff, b_eff

    w1, b1 = fold(W1, c1b, s1, t1)
    w2, b2 = fold(W2, c2b, s2, t2)
    w3, b3 = fold(W3, c3b, s3, t3)
    wf1, bf1 = fold(Wf1, f1b, s4, t4)
    wf2, bf2 = fold(Wf2, f2b, s5, t5)
    wf3 = Wf3.T.astype(jnp.bfloat16)
    bf3 = f3b[None, :].astype(jnp.float32)

    iden = jnp.eye(k, dtype=jnp.float32).reshape(1, k * k)

    return (w1, b1, w2, b2, w3, b3, wf1, bf1, wf2, bf2, wf3, bf3, iden)


def stnkd_reference(x_bkn, params, k):
    """Pure-JAX reference mirroring the PyTorch forward (eval-mode BN folded),
    with the same bf16-operand / f32-accumulation matmul precision as the kernel."""
    (w1, b1, w2, b2, w3, b3, wf1, bf1, wf2, bf2, wf3, bf3, iden) = params
    B, K, N = x_bkn.shape

    def mm(a, w):
        return jnp.dot(a.astype(jnp.bfloat16), w, preferred_element_type=jnp.float32)

    x = jnp.transpose(x_bkn, (0, 2, 1)).reshape(B * N, K)              # (B*N, K)
    h = jax.nn.relu(mm(x, w1) + b1)
    h = jax.nn.relu(mm(h, w2) + b2)
    h = jax.nn.relu(mm(h, w3) + b3)
    pooled = jnp.max(h.reshape(B, N, -1), axis=1)                      # (B, 1024)
    f = jax.nn.relu(mm(pooled, wf1) + bf1)
    f = jax.nn.relu(mm(f, wf2) + bf2)
    o = mm(f, wf3) + bf3 + iden
    return o.reshape(B, k, k)


if __name__ == "__main__":
    # Small, module-consistent shapes: batch=2, k=16 channels, N=32 points.
    B, K, N = 2, 16, 32
    key = jax.random.PRNGKey(0)
    kx, kp = jax.random.split(key)

    x = jax.random.normal(kx, (B, K, N), jnp.float32)   # PyTorch (B, C=k, N) layout
    params = make_params(kp, K)

    out = jax.block_until_ready(stnkd_forward(x, params, K))
    ref = jax.block_until_ready(stnkd_reference(x, params, K))
    np.testing.assert_allclose(np.asarray(out), np.asarray(ref), rtol=5e-4, atol=5e-4)

    print("KERNEL_OK")
</pallas_src>

<mosaic_0001>
module attributes {stable_mosaic.version = 11 : i64} {
  func.func @_stn_fused_kernel(%arg0: i32, %arg1: i32, %arg2: memref<1x16x32xf32, #tpu.memory_space<vmem>>, %arg3: memref<16x64xbf16, #tpu.memory_space<vmem>>, %arg4: memref<1x64xf32, #tpu.memory_space<vmem>>, %arg5: memref<64x128xbf16, #tpu.memory_space<vmem>>, %arg6: memref<1x128xf32, #tpu.memory_space<vmem>>, %arg7: memref<128x1024xbf16, #tpu.memory_space<vmem>>, %arg8: memref<1x1024xf32, #tpu.memory_space<vmem>>, %arg9: memref<1024x512xbf16, #tpu.memory_space<vmem>>, %arg10: memref<1x512xf32, #tpu.memory_space<vmem>>, %arg11: memref<512x256xbf16, #tpu.memory_space<vmem>>, %arg12: memref<1x256xf32, #tpu.memory_space<vmem>>, %arg13: memref<256x256xbf16, #tpu.memory_space<vmem>>, %arg14: memref<1x256xf32, #tpu.memory_space<vmem>>, %arg15: memref<1x256xf32, #tpu.memory_space<vmem>>, %arg16: memref<1x1x256xf32, #tpu.memory_space<vmem>>, %arg17: memref<1x1024xf32, #tpu.memory_space<vmem>>) attributes {dimension_semantics = [#tpu.dimension_semantics<parallel>, #tpu.dimension_semantics<arbitrary>], iteration_bounds = array<i64: 2, 1>, scalar_prefetch = 0 : i64, scratch_operands = 1 : i64, tpu.core_type = #tpu.core_type<tc>, window_params = [{transform_indices = @transform_0, window_bounds = array<i64: 1, 16, 32>}, {pipeline_mode = #tpu.pipeline_mode<synchronous>, transform_indices = @transform_1, window_bounds = array<i64: 16, 64>}, {pipeline_mode = #tpu.pipeline_mode<synchronous>, transform_indices = @transform_2, window_bounds = array<i64: 1, 64>}, {pipeline_mode = #tpu.pipeline_mode<synchronous>, transform_indices = @transform_3, window_bounds = array<i64: 64, 128>}, {pipeline_mode = #tpu.pipeline_mode<synchronous>, transform_indices = @transform_4, window_bounds = array<i64: 1, 128>}, {pipeline_mode = #tpu.pipeline_mode<synchronous>, transform_indices = @transform_5, window_bounds = array<i64: 128, 1024>}, {pipeline_mode = #tpu.pipeline_mode<synchronous>, transform_indices = @transform_6, window_bounds = array<i64: 1, 1024>}, {pipeline_mode = #tpu.pipeline_mode<synchronous>, transform_indices = @transform_7, window_bounds = array<i64: 1024, 512>}, {pipeline_mode = #tpu.pipeline_mode<synchronous>, transform_indices = @transform_8, window_bounds = array<i64: 1, 512>}, {pipeline_mode = #tpu.pipeline_mode<synchronous>, transform_indices = @transform_9, window_bounds = array<i64: 512, 256>}, {pipeline_mode = #tpu.pipeline_mode<synchronous>, transform_indices = @transform_10, window_bounds = array<i64: 1, 256>}, {pipeline_mode = #tpu.pipeline_mode<synchronous>, transform_indices = @transform_11, window_bounds = array<i64: 256, 256>}, {pipeline_mode = #tpu.pipeline_mode<synchronous>, transform_indices = @transform_12, window_bounds = array<i64: 1, 256>}, {pipeline_mode = #tpu.pipeline_mode<synchronous>, transform_indices = @transform_13, window_bounds = array<i64: 1, 256>}, {transform_indices = @transform_14, window_bounds = array<i64: 1, 1, 256>}]} {
    %c0_i32 = arith.constant 0 : i32
    %0 = arith.cmpi eq, %arg1, %c0_i32 : i32
    %1 = arith.extui %0 : i1 to i32
    %c0_i32_0 = arith.constant 0 : i32
    %2 = arith.cmpi ne, %1, %c0_i32_0 : i32
    scf.if %2 {
      %cst_27 = arith.constant 0.000000e+00 : f32
      %38 = vector.broadcast %cst_27 : f32 to vector<1x1024xf32>
      %c0_28 = arith.constant 0 : index
      %c0_29 = arith.constant 0 : index
      %39 = vector.load %arg17[%c0_28, %c0_29] : memref<1x1024xf32, #tpu.memory_space<vmem>>, vector<1x1024xf32>
      tpu.vector_store %arg17[%c0_28, %c0_29], %38 {strides = array<i32>} : memref<1x1024xf32, #tpu.memory_space<vmem>>, vector<1x1024xf32>,
    } else {
    }
    %c0 = arith.constant 0 : index
    %c0_1 = arith.constant 0 : index
    %c0_2 = arith.constant 0 : index
    %3 = vector.load %arg2[%c0, %c0_1, %c0_2] : memref<1x16x32xf32, #tpu.memory_space<vmem>>, vector<1x16x32xf32>
    %4 = tpu.transpose %3, [0, 2, 1] : vector<1x16x32xf32> -> vector<1x32x16xf32>
    %5 = vector.shape_cast %4 : vector<1x32x16xf32> to vector<32x16xf32>
    %6 = arith.truncf %5 : vector<32x16xf32> to vector<32x16xbf16>
    %c0_3 = arith.constant 0 : index
    %c0_4 = arith.constant 0 : index
    %7 = vector.load %arg3[%c0_3, %c0_4] : memref<16x64xbf16, #tpu.memory_space<vmem>>, vector<16x64xbf16>
    %cst = arith.constant dense<0.000000e+00> : vector<32x64xf32>
    %8 = tpu.matmul %6, %7, %cst {dimension_numbers = #tpu.dot_dimension_numbers<[1], [0], [0], [1], [0, 0, 1, 1], [], []>} : vector<32x16xbf16>, vector<16x64xbf16>, vector<32x64xf32> -> vector<32x64xf32>
    %c0_5 = arith.constant 0 : index
    %c0_6 = arith.constant 0 : index
    %9 = vector.load %arg4[%c0_5, %c0_6] : memref<1x64xf32, #tpu.memory_space<vmem>>, vector<1x64xf32>
    %10 = vector.broadcast %9 : vector<1x64xf32> to vector<32x64xf32>
    %11 = arith.addf %8, %10 : vector<32x64xf32>
    %cst_7 = arith.constant 0.000000e+00 : f32
    %12 = vector.broadcast %cst_7 : f32 to vector<32x64xf32>
    %13 = arith.maximumf %11, %12 : vector<32x64xf32>
    %14 = arith.truncf %13 : vector<32x64xf32> to vector<32x64xbf16>
    %c0_8 = arith.constant 0 : index
    %c0_9 = arith.constant 0 : index
    %15 = vector.load %arg5[%c0_8, %c0_9] : memref<64x128xbf16, #tpu.memory_space<vmem>>, vector<64x128xbf16>
    %cst_10 = arith.constant dense<0.000000e+00> : vector<32x128xf32>
    %16 = tpu.matmul %14, %15, %cst_10 {dimension_numbers = #tpu.dot_dimension_numbers<[1], [0], [0], [1], [0, 0, 1, 1], [], []>} : vector<32x64xbf16>, vector<64x128xbf16>, vector<32x128xf32> -> vector<32x128xf32>
    %c0_11 = arith.constant 0 : index
    %c0_12 = arith.constant 0 : index
    %17 = vector.load %arg6[%c0_11, %c0_12] : memref<1x128xf32, #tpu.memory_space<vmem>>, vector<1x128xf32>
    %18 = vector.broadcast %17 : vector<1x128xf32> to vector<32x128xf32>
    %19 = arith.addf %16, %18 : vector<32x128xf32>
    %cst_13 = arith.constant 0.000000e+00 : f32
    %20 = vector.broadcast %cst_13 : f32 to vector<32x128xf32>
    %21 = arith.maximumf %19, %20 : vector<32x128xf32>
    %22 = arith.truncf %21 : vector<32x128xf32> to vector<32x128xbf16>
    %c0_14 = arith.constant 0 : index
    %c0_15 = arith.constant 0 : index
    %23 = vector.load %arg7[%c0_14, %c0_15] : memref<128x1024xbf16, #tpu.memory_space<vmem>>, vector<128x1024xbf16>
    %cst_16 = arith.constant dense<0.000000e+00> : vector<32x1024xf32>
    %24 = tpu.matmul %22, %23, %cst_16 {dimension_numbers = #tpu.dot_dimension_numbers<[1], [0], [0], [1], [0, 0, 1, 1], [], []>} : vector<32x128xbf16>, vector<128x1024xbf16>, vector<32x1024xf32> -> vector<32x1024xf32>
    %c0_17 = arith.constant 0 : index
    %c0_18 = arith.constant 0 : index
    %25 = vector.load %arg8[%c0_17, %c0_18] : memref<1x1024xf32, #tpu.memory_space<vmem>>, vector<1x1024xf32>
    %26 = vector.broadcast %25 : vector<1x1024xf32> to vector<32x1024xf32>
    %27 = arith.addf %24, %26 : vector<32x1024xf32>
    %cst_19 = arith.constant 0.000000e+00 : f32
    %28 = vector.broadcast %cst_19 : f32 to vector<32x1024xf32>
    %29 = arith.maximumf %27, %28 : vector<32x1024xf32>
    %cst_20 = arith.constant dense<0xFF800000> : vector<1024xf32>
    %30 = vector.multi_reduction <maximumf>, %29, %cst_20 [0] : vector<32x1024xf32> to vector<1024xf32>
    %31 = vector.shape_cast %30 : vector<1024xf32> to vector<1x1024xf32>
    %c0_21 = arith.constant 0 : index
    %c0_22 = arith.constant 0 : index
    %32 = vector.load %arg17[%c0_21, %c0_22] : memref<1x1024xf32, #tpu.memory_space<vmem>>, vector<1x1024xf32>
    %33 = arith.maximumf %32, %31 : vector<1x1024xf32>
    %c0_23 = arith.constant 0 : index
    %c0_24 = arith.constant 0 : index
    %34 = vector.load %arg17[%c0_23, %c0_24] : memref<1x1024xf32, #tpu.memory_space<vmem>>, vector<1x1024xf32>
    tpu.vector_store %arg17[%c0_23, %c0_24], %33 {strides = array<i32>} : memref<1x1024xf32, #tpu.memory_space<vmem>>, vector<1x1024xf32>,
    %c0_i32_25 = arith.constant 0 : i32
    %35 = arith.cmpi eq, %arg1, %c0_i32_25 : i32
    %36 = arith.extui %35 : i1 to i32
    %c0_i32_26 = arith.constant 0 : i32
    %37 = arith.cmpi ne, %36, %c0_i32_26 : i32
    scf.if %37 {
      %c0_27 = arith.constant 0 : index
      %c0_28 = arith.constant 0 : index
      %38 = vector.load %arg17[%c0_27, %c0_28] : memref<1x1024xf32, #tpu.memory_space<vmem>>, vector<1x1024xf32>
      %39 = arith.truncf %38 : vector<1x1024xf32> to vector<1x1024xbf16>
      %c0_29 = arith.constant 0 : index
      %c0_30 = arith.constant 0 : index
      %40 = vector.load %arg9[%c0_29, %c0_30] : memref<1024x512xbf16, #tpu.memory_space<vmem>>, vector<1024x512xbf16>
      %cst_31 = arith.constant dense<0.000000e+00> : vector<1x512xf32>
      %41 = tpu.matmul %39, %40, %cst_31 {dimension_numbers = #tpu.dot_dimension_numbers<[1], [0], [0], [1], [0, 0, 1, 1], [], []>} : vector<1x1024xbf16>, vector<1024x512xbf16>, vector<1x512xf32> -> vector<1x512xf32>
      %c0_32 = arith.constant 0 : index
      %c0_33 = arith.constant 0 : index
      %42 = vector.load %arg10[%c0_32, %c0_33] : memref<1x512xf32, #tpu.memory_space<vmem>>, vector<1x512xf32>
      %43 = arith.addf %41, %42 : vector<1x512xf32>
      %cst_34 = arith.constant 0.000000e+00 : f32
      %44 = vector.broadcast %cst_34 : f32 to vector<1x512xf32>
      %45 = arith.maximumf %43, %44 : vector<1x512xf32>
      %46 = arith.truncf %45 : vector<1x512xf32> to vector<1x512xbf16>
      %c0_35 = arith.constant 0 : index
      %c0_36 = arith.constant 0 : index
      %47 = vector.load %arg11[%c0_35, %c0_36] : memref<512x256xbf16, #tpu.memory_space<vmem>>, vector<512x256xbf16>
      %cst_37 = arith.constant dense<0.000000e+00> : vector<1x256xf32>
      %48 = tpu.matmul %46, %47, %cst_37 {dimension_numbers = #tpu.dot_dimension_numbers<[1], [0], [0], [1], [0, 0, 1, 1], [], []>} : vector<1x512xbf16>, vector<512x256xbf16>, vector<1x256xf32> -> vector<1x256xf32>
      %c0_38 = arith.constant 0 : index
      %c0_39 = arith.constant 0 : index
      %49 = vector.load %arg12[%c0_38, %c0_39] : memref<1x256xf32, #tpu.memory_space<vmem>>, vector<1x256xf32>
      %50 = arith.addf %48, %49 : vector<1x256xf32>
      %cst_40 = arith.constant 0.000000e+00 : f32
      %51 = vector.broadcast %cst_40 : f32 to vector<1x256xf32>
      %52 = arith.maximumf %50, %51 : vector<1x256xf32>
      %53 = arith.truncf %52 : vector<1x256xf32> to vector<1x256xbf16>
      %c0_41 = arith.constant 0 : index
      %c0_42 = arith.constant 0 : index
      %54 = vector.load %arg13[%c0_41, %c0_42] : memref<256x256xbf16, #tpu.memory_space<vmem>>, vector<256x256xbf16>
      %cst_43 = arith.constant dense<0.000000e+00> : vector<1x256xf32>
      %55 = tpu.matmul %53, %54, %cst_43 {dimension_numbers = #tpu.dot_dimension_numbers<[1], [0], [0], [1], [0, 0, 1, 1], [], []>} : vector<1x256xbf16>, vector<256x256xbf16>, vector<1x256xf32> -> vector<1x256xf32>
      %c0_44 = arith.constant 0 : index
      %c0_45 = arith.constant 0 : index
      %56 = vector.load %arg14[%c0_44, %c0_45] : memref<1x256xf32, #tpu.memory_space<vmem>>, vector<1x256xf32>
      %57 = arith.addf %55, %56 : vector<1x256xf32>
      %c0_46 = arith.constant 0 : index
      %c0_47 = arith.constant 0 : index
      %58 = vector.load %arg15[%c0_46, %c0_47] : memref<1x256xf32, #tpu.memory_space<vmem>>, vector<1x256xf32>
      %59 = arith.addf %57, %58 : vector<1x256xf32>
      %60 = vector.shape_cast %59 : vector<1x256xf32> to vector<1x1x256xf32>
      %c0_48 = arith.constant 0 : index
      %c0_49 = arith.constant 0 : index
      %c0_50 = arith.constant 0 : index
      %61 = vector.load %arg16[%c0_48, %c0_49, %c0_50] : memref<1x1x256xf32, #tpu.memory_space<vmem>>, vector<1x1x256xf32>
      tpu.vector_store %arg16[%c0_48, %c0_49, %c0_50], %60 {strides = array<i32>} : memref<1x1x256xf32, #tpu.memory_space<vmem>>, vector<1x1x256xf32>,
    } else {
    }
    return
  }
  func.func @transform_0(%arg0: i32, %arg1: i32) -> (i32, i32, i32) {
    %c0_i32 = arith.constant 0 : i32
    %c0_i32_0 = arith.constant 0 : i32
    return %arg0, %c0_i32, %arg1 : i32, i32, i32
  }
  func.func @transform_1(%arg0: i32, %arg1: i32) -> (i32, i32) {
    %c0_i32 = arith.constant 0 : i32
    %c0_i32_0 = arith.constant 0 : i32
    %c0_i32_1 = arith.constant 0 : i32
    return %c0_i32, %c0_i32_0 : i32, i32
  }
  func.func @transform_2(%arg0: i32, %arg1: i32) -> (i32, i32) {
    %c0_i32 = arith.constant 0 : i32
    %c0_i32_0 = arith.constant 0 : i32
    %c0_i32_1 = arith.constant 0 : i32
    return %c0_i32, %c0_i32_0 : i32, i32
  }
  func.func @transform_3(%arg0: i32, %arg1: i32) -> (i32, i32) {
    %c0_i32 = arith.constant 0 : i32
    %c0_i32_0 = arith.constant 0 : i32
    %c0_i32_1 = arith.constant 0 : i32
    return %c0_i32, %c0_i32_0 : i32, i32
  }
  func.func @transform_4(%arg0: i32, %arg1: i32) -> (i32, i32) {
    %c0_i32 = arith.constant 0 : i32
    %c0_i32_0 = arith.constant 0 : i32
    %c0_i32_1 = arith.constant 0 : i32
    return %c0_i32, %c0_i32_0 : i32, i32
  }
  func.func @transform_5(%arg0: i32, %arg1: i32) -> (i32, i32) {
    %c0_i32 = arith.constant 0 : i32
    %c0_i32_0 = arith.constant 0 : i32
    %c0_i32_1 = arith.constant 0 : i32
    return %c0_i32, %c0_i32_0 : i32, i32
  }
  func.func @transform_6(%arg0: i32, %arg1: i32) -> (i32, i32) {
    %c0_i32 = arith.constant 0 : i32
    %c0_i32_0 = arith.constant 0 : i32
    %c0_i32_1 = arith.constant 0 : i32
    return %c0_i32, %c0_i32_0 : i32, i32
  }
  func.func @transform_7(%arg0: i32, %arg1: i32) -> (i32, i32) {
    %c0_i32 = arith.constant 0 : i32
    %c0_i32_0 = arith.constant 0 : i32
    %c0_i32_1 = arith.constant 0 : i32
    return %c0_i32, %c0_i32_0 : i32, i32
  }
  func.func @transform_8(%arg0: i32, %arg1: i32) -> (i32, i32) {
    %c0_i32 = arith.constant 0 : i32
    %c0_i32_0 = arith.constant 0 : i32
    %c0_i32_1 = arith.constant 0 : i32
    return %c0_i32, %c0_i32_0 : i32, i32
  }
  func.func @transform_9(%arg0: i32, %arg1: i32) -> (i32, i32) {
    %c0_i32 = arith.constant 0 : i32
    %c0_i32_0 = arith.constant 0 : i32
    %c0_i32_1 = arith.constant 0 : i32
    return %c0_i32, %c0_i32_0 : i32, i32
  }
  func.func @transform_10(%arg0: i32, %arg1: i32) -> (i32, i32) {
    %c0_i32 = arith.constant 0 : i32
    %c0_i32_0 = arith.constant 0 : i32
    %c0_i32_1 = arith.constant 0 : i32
    return %c0_i32, %c0_i32_0 : i32, i32
  }
  func.func @transform_11(%arg0: i32, %arg1: i32) -> (i32, i32) {
    %c0_i32 = arith.constant 0 : i32
    %c0_i32_0 = arith.constant 0 : i32
    %c0_i32_1 = arith.constant 0 : i32
    return %c0_i32, %c0_i32_0 : i32, i32
  }
  func.func @transform_12(%arg0: i32, %arg1: i32) -> (i32, i32) {
    %c0_i32 = arith.constant 0 : i32
    %c0_i32_0 = arith.constant 0 : i32
    %c0_i32_1 = arith.constant 0 : i32
    return %c0_i32, %c0_i32_0 : i32, i32
  }
  func.func @transform_13(%arg0: i32, %arg1: i32) -> (i32, i32) {
    %c0_i32 = arith.constant 0 : i32
    %c0_i32_0 = arith.constant 0 : i32
    %c0_i32_1 = arith.constant 0 : i32
    return %c0_i32, %c0_i32_0 : i32, i32
  }
  func.func @transform_14(%arg0: i32, %arg1: i32) -> (i32, i32, i32) {
    %c0_i32 = arith.constant 0 : i32
    %c0_i32_0 = arith.constant 0 : i32
    %c0_i32_1 = arith.constant 0 : i32
    return %arg0, %c0_i32, %c0_i32_0 : i32, i32, i32
  }
}

</mosaic_0001>

<bundles_post_ra>
// kernel: tpu_custom_call.1
= control target key start
LH: loop header
LB: loop body
LE: loop exit
PB: predicated region body
PF: predicated region fallthrough
CT: control target
= control target key end

     0   :  { %s6536_s0 = inlined_call_operand.hbm [shape: f32[2,16,32], index: 0, kind: input, shape index: {}]   ;;  %s6537_s1 = inlined_call_operand.hbm [shape: bf16[16,64], index: 1, kind: input, shape index: {}]   ;;  %s6538_s2 = inlined_call_operand.hbm [shape: f32[1,64], index: 2, kind: input, shape index: {}]   ;;  %s6539_s3 = inlined_call_operand.hbm [shape: bf16[64,128], index: 3, kind: input, shape index: {}]   ;;  %s6540_s4 = inlined_call_operand.hbm [shape: f32[1,128], index: 4, kind: input, shape index: {}]   ;;  %s6541_s5 = inlined_call_operand.hbm [shape: bf16[128,1024], index: 5, kind: input, shape index: {}]   ;;  %s6542_s6 = inlined_call_operand.vmem [shape: f32[1,1024], index: 6, kind: input, shape index: {}]   ;;  %s6543_s7 = inlined_call_operand.hbm [shape: bf16[1024,512], index: 7, kind: input, shape index: {}]   ;;  %s6544_s8 = inlined_call_operand.vmem [shape: f32[1,512], index: 8, kind: input, shape index: {}]   ;;  %s6545_s9 = inlined_call_operand.hbm [shape: bf16[512,256], index: 9, kind: input, shape index: {}]   ;;  %s6546_s10 = inlined_call_operand.vmem [shape: f32[1,256], index: 10, kind: input, shape index: {}]   ;;  %s6547_s11 = inlined_call_operand.hbm [shape: bf16[256,256], index: 11, kind: input, shape index: {}]   ;;  %s6548_s12 = inlined_call_operand.vmem [shape: f32[1,256], index: 12, kind: input, shape index: {}]   ;;  %s6549_s13 = inlined_call_operand.vmem [shape: f32[1,256], index: 13, kind: input, shape index: {}]   ;;  %s6550_s14 = inlined_call_operand.hbm [shape: f32[2,1,256], index: 14, kind: output, shape index: {}]  }
   0x1   :  { %6558 = sst [smem:[#allocation26_spill]] %s6537_s1 }
   0x2   :  { %6559 = sst [smem:[#allocation27_spill]] %s6538_s2 }
   0x3   :  { %6560 = sst [smem:[#allocation28_spill]] %s6539_s3 }
   0x4   :  { %6561 = sst [smem:[#allocation29_spill]] %s6540_s4 }
   0x5   :  { %6562 = sst [smem:[#allocation30_spill]] %s6541_s5 }
   0x6   :  { %6563 = sst [smem:[#allocation31_spill]] %s6543_s7 }
   0x7   :  { %6564 = sst [smem:[#allocation32_spill]] %s6545_s9 }
   0x8   :  { %6565 = sst [smem:[#allocation33_spill]] %s6548_s12 }
   0x9   :  { %6566 = sst [smem:[#allocation34_spill]] %s6549_s13 }
   0xa   :  { %6567 = sst [smem:[#allocation35_spill]] %s6550_s14 }
   0xb   :  { %19 = vsyncpa [#allocation4], 0 }
   0xc   :  { %21 = vsyncpa [#allocation4 + $0x1], 0 }
   0xd   :  { %22 = vsyncpa [#allocation7], 0 }
   0xe   :  { %23 = vsyncpa [#allocation10], 0 }
   0xf   :  { %24 = vsyncpa [#allocation13], 0 }
  0x10   :  { %25 = vsyncpa [#allocation16], 0 }
  0x11   :  { %26 = vsyncpa [#allocation5], 0 }
  0x12   :  { %28 = vsyncpa [#allocation5 + $0x1], 0  ;;  %s6121_s29 = smov 0   ;;  %s6123_s30 = smov 0  }
  0x13   :  { %s6125_s15 = smov 0   ;;  %s6127_s16 = smov 0  }
  0x14   :  { %s6129_s17 = smov 0   ;;  %s6131_s18 = smov 0  }
  0x15 LB: > { %6568 = sst [smem:[#allocation25_spill]] %s6016_s16  ;;  %s6551_s19 = sadd.s32 4294967295, %s6024_s18   ;;  %s6024_s18 = sphi %s6131_s18, %s34_s18   ;;  %s6020_s17 = sphi %s6129_s17, %s6600_s17   ;;  %s6016_s16 = sphi %s6127_s16, %s6599_s16   ;;  %s6012_s15 = sphi %s6125_s15, %s6598_s15   ;;  %s6008_s30 = sphi %s6123_s30, %s6597_s30   ;;  %s6004_s29 = sphi %s6121_s29, %s6596_s29  }
  0x16   : > { %p4520_p0 = scmp.ge.s32.totalorder %s6024_s18, 1  ;;  %p6155_p1 = scmp.eq.s32.totalorder %s6551_s19, 0 }
  0x17   : > { %p378_p2 = scmp.lt.s32.totalorder %s6024_s18, 3  ;;  %s6026_s22 = smov [#allocation6]  }
  0x18   : > { %s6569_s20 = scalar_select %p6155_p1, 1, 0 }
  0x19   : > { %p6160_p3 = pnand %p4520_p0, %p378_p2  ;;  %s390_s23 = sshll.u32 %s6026_s22, 4  ;;  %s391_s23 = int_to_ptr.vmem [resolvable:$true] %s390_s23 }
  0x1a   : > { %s6027_s25 = smov [#allocation9]   ;;  %s6028_s27 = smov [#allocation12]  }
  0x1b   : > { %s6570_s21 = scalar_select %p6160_p3, 1, 0 }
  0x1c   : > { %p5041_p4 = pneg %p6160_p3  ;;  %s414_s26 = sshll.u32 %s6027_s25, 4  ;;  %s415_s26 = int_to_ptr.vmem [resolvable:$true] %s414_s26 }
  0x1d   : > { %s438_s28 = sshll.u32 %s6028_s27, 4  ;;  %s5703_s22 = scalar_lea.vmem %s391_s23, 128  ;;  %s439_s28 = int_to_ptr.vmem [resolvable:$true] %s438_s28 }
  0x1e   : > { %p6169_p6 = pnand %p5041_p4, %p6155_p1  ;;  %p5704_p8 = scmp.ne.s32.totalorder %s391_s23, %s5703_s22 }
  0x1f   : > { %p5711_p11 = scmp.lt.s32.totalorder %s391_s23, %s391_s23  ;;  %p5712_p12 = scmp.lt.s32.totalorder %s5703_s22, %s5703_s22 }
  0x20   : > { %p6175_p7 = pneg %p6169_p6 }
  0x21   : > { %p5713_p13 = por %p5712_p12, %p5711_p11 }
  0x22   : > { %p5706_p9 = pnand %p5704_p8, %p6175_p7 }
  0x24   : > { %p5707_p10 = pneg %p5706_p9 }
  0x26   : > { %p5714_p0 = pnand %p5713_p13, %p5707_p10 }
  0x28   : > { %5717 = shalt.err (!%p5714_p0)
}
  0x29   : > { %s6029_s25 = smov 64   ;;  %s6030_s27 = smov 4  }
  0x2a   : > { %s6573_s1 = sld [smem:[#allocation26_spill]]  ;;  %s5729_s16 = scalar_lea.vmem %s415_s26, 512 }
  0x2b   : > { %p5730_p2 = scmp.ne.s32.totalorder %s415_s26, %s5729_s16  ;;  %p5737_p9 = scmp.lt.s32.totalorder %s415_s26, %s415_s26 }
  0x2c   : > { %p5738_p5 = scmp.lt.s32.totalorder %s5729_s16, %s5729_s16 }
  0x2d   : > { %p5732_p4 = pnand %p5730_p2, %p6175_p7 }
  0x2e   : > { %p5739_p3 = por %p5738_p5, %p5737_p9 }
  0x2f   : > { %p5733_p8 = pneg %p5732_p4 }
  0x30   : > { %5044 = dma.hbm_to_vmem [thread:$0]  (!%p6169_p6), %s6573_s1, 128, %s391_s23, [#allocation7], %s6029_s25, %s6029_s25, %s6030_s27  }
  0x31   : > { %p5740_p11 = pnand %p5739_p3, %p5733_p8 }
  0x33   : > { %5743 = shalt.err (!%p5740_p11)
}
  0x34   : > { %s6574_s3 = sld [smem:[#allocation28_spill]]  ;;  %s5755_s13 = scalar_lea.vmem %s439_s28, 8192 }
  0x35   : > { %p5756_p10 = scmp.ne.s32.totalorder %s439_s28, %s5755_s13  ;;  %p5763_p0 = scmp.lt.s32.totalorder %s439_s28, %s439_s28 }
  0x36   : > { %p5764_p2 = scmp.lt.s32.totalorder %s5755_s13, %s5755_s13 }
  0x37   : > { %p5758_p12 = pnand %p5756_p10, %p6175_p7 }
  0x38   : > { %p5765_p4 = por %p5764_p2, %p5763_p0 }
  0x39   : > { %p5759_p13 = pneg %p5758_p12 }
  0x3a   : > { %5050 = dma.hbm_to_vmem [thread:$0]  (!%p6169_p6), %s6574_s3, 512, %s415_s26, [#allocation10], %s6029_s25, %s6029_s25, %s6030_s27  }
  0x3b   : > { %p5766_p1 = pnand %p5765_p4, %p5759_p13 }
  0x3d   : > { %5769 = shalt.err (!%p5766_p1)
}
  0x3e   : > { %s6031_s14 = smov 512   ;;  %s6032_s16 = smov 32  }
  0x3f   : > { %s6575_s5 = sld [smem:[#allocation30_spill]]  ;;  %s6033_s26 = smov [#allocation15]  }
  0x40   : > { %s470_s25 = sshll.u32 %s6033_s26, 4  ;;  %s471_s25 = int_to_ptr.vmem [resolvable:$true] %s470_s25 }
  0x41   : > { %s5781_s27 = scalar_lea.vmem %s471_s25, 8192  ;;  %p5789_p9 = scmp.lt.s32.totalorder %s471_s25, %s471_s25 }
  0x42   : > { %p5782_p3 = scmp.ne.s32.totalorder %s471_s25, %s5781_s27  ;;  %p5790_p11 = scmp.lt.s32.totalorder %s5781_s27, %s5781_s27 }
  0x44   : > { %p5784_p5 = pnand %p5782_p3, %p6175_p7  ;;  %p5791_p1 = por %p5790_p11, %p5789_p9 }
  0x45   : > { %5056 = dma.hbm_to_vmem [thread:$0]  (!%p6169_p6), %s6575_s5, 8192, %s439_s28, [#allocation13], %s6031_s14, %s6031_s14, %s6032_s16  }
  0x46   : > { %p5785_p8 = pneg %p5784_p5 }
  0x48   : > { %p5792_p10 = pnand %p5791_p1, %p5785_p8 }
  0x4a   : > { %5795 = shalt.err (!%p5792_p10)
}
  0x4b   : > { %s6556_s22 = smov 128   ;;  %s6557_s13 = smov 8  }
  0x4c   : > { %s6576_s9 = sld [smem:[#allocation32_spill]]  ;;  %s6036_s16 = smov [#allocation8]  }
  0x4d   : > { %s404_s23 = sshll.u32 %s6036_s16, 4  ;;  %s6037_s12 = smov [#allocation11]   ;;  %s405_s23 = int_to_ptr.vmem [resolvable:$true] %s404_s23 }
  0x4e   : > { %s428_s26 = sshll.u32 %s6037_s12, 4  ;;  %s5807_s27 = scalar_lea.vmem %s405_s23, 16  ;;  %s429_s26 = int_to_ptr.vmem [resolvable:$true] %s428_s26 }
  0x4f   : > { %p5808_p12 = scmp.ne.s32.totalorder %s405_s23, %s5807_s27  ;;  %s5814_s1 = scalar_lea.vmem %s405_s23, 32 }
  0x50   : > { %p5815_p2 = scmp.lt.s32.totalorder %s405_s23, %s405_s23  ;;  %p5816_p4 = scmp.lt.s32.totalorder %s5814_s1, %s5807_s27 }
  0x51   : > { %p5810_p13 = pnand %p5808_p12, %p6175_p7 }
  0x52   : > { %5062 = dma.hbm_to_vmem [thread:$0]  (!%p6169_p6), %s6576_s9, 8192, %s471_s25, [#allocation16], %s6556_s22, %s6556_s22, %s6557_s13  }
  0x53   : > { %p5811_p0 = pneg %p5810_p13  ;;  %p5817_p3 = por %p5816_p4, %p5815_p2 }
  0x55   : > { %p5818_p5 = pnand %p5817_p3, %p5811_p0 }
  0x57   : > { %5821 = shalt.err (!%p5818_p5)
}
  0x58   : > { %s6577_s2 = sld [smem:[#allocation27_spill]]  ;;  %s5833_s14 = scalar_lea.vmem %s429_s26, 16 }
  0x59   : > { %p5834_p8 = scmp.ne.s32.totalorder %s429_s26, %s5833_s14  ;;  %s5840_s16 = scalar_lea.vmem %s429_s26, 32 }
  0x5a   : > { %p5841_p1 = scmp.lt.s32.totalorder %s429_s26, %s429_s26  ;;  %p5842_p10 = scmp.lt.s32.totalorder %s5840_s16, %s5833_s14 }
  0x5b   : > { %p5836_p9 = pnand %p5834_p8, %p6175_p7 }
  0x5c   : > { %p5843_p12 = por %p5842_p10, %p5841_p1 }
  0x5d   : > { %p5837_p11 = pneg %p5836_p9 }
  0x5e   : > { %5047 = dma.hbm_to_vmem [thread:$0]  (!%p6169_p6), %s6577_s2, 16, %s405_s23, [#allocation7]  }
  0x5f   : > { %p5844_p13 = pnand %p5843_p12, %p5837_p11 }
  0x61   : > { %5847 = shalt.err (!%p5844_p13)
}
  0x62   : > { %s6578_s4 = sld [smem:[#allocation29_spill]]  ;;  %s6038_s27 = smov [#allocation14]  }
  0x63   : > { %s454_s23 = sshll.u32 %s6038_s27, 4  ;;  %s455_s23 = int_to_ptr.vmem [resolvable:$true] %s454_s23 }
  0x64   : > { %s5859_s25 = scalar_lea.vmem %s455_s23, 32768  ;;  %p5867_p3 = scmp.lt.s32.totalorder %s455_s23, %s455_s23 }
  0x65   : > { %p5860_p0 = scmp.ne.s32.totalorder %s455_s23, %s5859_s25  ;;  %p5868_p5 = scmp.lt.s32.totalorder %s5859_s25, %s5859_s25 }
  0x67   : > { %p5862_p2 = pnand %p5860_p0, %p6175_p7  ;;  %p5869_p8 = por %p5868_p5, %p5867_p3 }
  0x68   : > { %5053 = dma.hbm_to_vmem [thread:$0]  (!%p6169_p6), %s6578_s4, 16, %s429_s26, [#allocation10]  }
  0x69   : > { %p5863_p4 = pneg %p5862_p2 }
  0x6b   : > { %p5870_p9 = pnand %p5869_p8, %p5863_p4 }
  0x6d   : > { %5873 = shalt.err (!%p5870_p9)
}
  0x6e   : > { %s6039_s28 = smov 256   ;;  %s6040_s14 = smov 16  }
  0x6f   : > { %s6579_s7 = sld [smem:[#allocation31_spill]]  ;;  %s6041_s1 = smov [#allocation17]  }
  0x70   : > { %s486_s12 = sshll.u32 %s6041_s1, 4  ;;  %s487_s12 = int_to_ptr.vmem [resolvable:$true] %s486_s12 }
  0x71   : > { %s5885_s27 = scalar_lea.vmem %s487_s12, 4096  ;;  %p5893_p12 = scmp.lt.s32.totalorder %s487_s12, %s487_s12 }
  0x72   : > { %p5886_p11 = scmp.ne.s32.totalorder %s487_s12, %s5885_s27  ;;  %p5894_p13 = scmp.lt.s32.totalorder %s5885_s27, %s5885_s27 }
  0x74   : > { %p5888_p1 = pnand %p5886_p11, %p6175_p7  ;;  %p5895_p0 = por %p5894_p13, %p5893_p12 }
  0x75   : > { %5059 = dma.hbm_to_vmem [thread:$0]  (!%p6169_p6), %s6579_s7, 32768, %s455_s23, [#allocation13], %s6039_s28, %s6039_s28, %s6040_s14  }
  0x76   : > { %p5889_p10 = pneg %p5888_p1 }
  0x78   : > { %p5896_p2 = pnand %p5895_p0, %p5889_p10 }
  0x7a   : > { %5899 = shalt.err (!%p5896_p2)
}
  0x7b   : > { %5065 = dma.hbm_to_vmem [thread:$0]  (!%p6169_p6), %s6547_s11, 4096, %s487_s12, [#allocation16], %s6556_s22, %s6556_s22, %s6557_s13  }
  0x7c   : > { %s4519_s19 = sadd.s32 4294967294, %s6024_s18   ;;  %s46_s24 = sadd.s32 1, %s6020_s17 }
  0x7d   : > { %p48_p7 = scmp.ge.s32.totalorder %s46_s24, 2  ;;  %s55_s28 = sadd.s32 1, %s6012_s15 }
  0x7e   : > { %p62_p4 = scmp.ne.s32.totalorder %s6012_s15, %s6008_s30  ;;  %p63_p3 = scmp.eq.s32.totalorder %s6024_s18, 0 }
  0x7f   : > { %s6602_s24 = smov (%p48_p7, %s46_s24), 0  ;;  %p68_p8 = scmp.ne.s32.totalorder %s6008_s30, %s6004_s29 }
  0x80   : > { %p6249_p5 = por %p63_p3, %p62_p4  ;;  %s50_s16 = ssub.s32 %s6020_s17, %s6602_s24 }
  0x81   : > { %s6581_s26 = sadd.s32 4294967295, %s6024_s18   ;;  %p53_p9 = scmp.eq.s32.totalorder %s50_s16, 0 }
  0x82   : > { %p365_p6 = scmp.eq.s32.totalorder %s6581_s26, 1  ;;  %p6582_p11 = scmp.ne.s32.totalorder %s6569_s20, 0 }
  0x83   : > { %p371_p12 = scmp.eq.s32.totalorder %s4519_s19, 1  ;;  %p5082_p0 = scmp.lt.s32.totalorder %s6024_s18, 2 }
  0x84   : > { %p6261_p1 = por %p6582_p11, %p68_p8  ;;  %p6265_p10 = por %p365_p6, %p62_p4 }
  0x85   : > { %s6270_s27 = scalar_select %p53_p9, %s6012_s15, %s55_s28  }
  0x86   : > { %p6272_p13 = por %p371_p12, %p68_p8  ;;  %s506_s23 = sand.u32 1, %s6012_s15  }
  0x87   : > { %s4976_s26 = sshll.u32 %s6020_s17, 8  ;;  %s4530_s16 = sshll.u32 %s506_s23, 4 }
  0x88   : > { %s517_s2 = scalar_lea.hbm %s6536_s0, %s4976_s26  ;;  %s510_s3 = scalar_lea.vmem [#allocation3], %s4530_s16 }
  0x89   : > { %s518_s4 = sshll.u32 %s510_s3, 4  ;;  %p6284_p2 = pnand %p5082_p0, %p6249_p5  ;;  %s519_s4 = int_to_ptr.vmem [resolvable:$true] %s518_s4 }
  0x8a   : > { %s507_s19 = scalar_lea.sflag [#allocation4], %s506_s23  ;;  %s5913_s28 = scalar_lea.vmem %s519_s4, 256 }
  0x8b   : > { %p5902_p7 = pneg %p6284_p2  ;;  %p5914_p4 = scmp.ne.s32.totalorder %s519_s4, %s5913_s28 }
  0x8c   : > { %s6042_s7 = smov [#allocation3]  }
  0x8d   : > { %p5916_p3 = pnand %p5914_p4, %p5902_p7  ;;  %s5918_s9 = sshll.u32 %s6042_s7, 4  ;;  %s5919_s9 = int_to_ptr.vmem [resolvable:$false] %s5918_s9 }
  0x8e   : > { %s5920_s22 = scalar_lea.vmem %s5919_s9, 512  ;;  %p5921_p6 = scmp.lt.s32.totalorder %s519_s4, %s5919_s9 }
  0x8f   : > { %p5917_p8 = pneg %p5916_p3  ;;  %p5922_p9 = scmp.lt.s32.totalorder %s5920_s22, %s5913_s28 }
  0x91   : > { %p5923_p11 = por %p5922_p9, %p5921_p6 }
  0x93   : > { %p5924_p5 = pnand %p5923_p11, %p5917_p8 }
  0x95   : > { %5927 = shalt.err (!%p5924_p5)
}
  0x96   : > { %s6587_s3 = smov 8   ;;  %s6588_s13 = smov 128  }
  0x97   : > { %5069 = dma.hbm_to_vmem [thread:$0]  (!%p6284_p2), %s517_s2, 256, %s519_s4, %s507_s19, %s6588_s13, %s6588_s13, %s6587_s3  }
  0x98   : > { %p6589_p12 = scmp.ne.s32.totalorder %s6570_s21, 0 }
  0x99   : > { %s6298_s14 = sand.u32 (!%p6589_p12), 1, %s6008_s30  }
  0x9a   : > { %530 = sbr.rel (%p6589_p12) target bundleno = 1842 (0x732), region = 76  ;;  %s4534_s7 = sshll.u32 (!%p6589_p12), %s6298_s14, 4 }
  0x9b   : > { %s533_s9 = scalar_lea.sflag (!%p6589_p12), [#allocation4], %s6298_s14  ;;  %s536_s23 = scalar_lea.vmem (!%p6589_p12), [#allocation3], %s4534_s7 }
  0x9f   : > { %5979 = dma.done.wait (%p6261_p1), %s533_s9, 256  }
  0xa0   : > { %5981 = vsyncadd (%p6261_p1), %s533_s9, 4294967040  ;;  %p6590_p0 = scmp.ne.s32.totalorder %s6569_s20, 0 }
  0xa2   : > { %5983 = dma.done.wait (%p6590_p0), [#allocation7], 144  }
  0xa3   : > { %5985 = vsyncadd (%p6590_p0), [#allocation7], 4294967152 }
  0xa4   : > { %5987 = dma.done.wait (%p6590_p0), [#allocation10], 528  }
  0xa5   : > { %5989 = vsyncadd (%p6590_p0), [#allocation10], 4294966768 }
  0xa6   : > { %5991 = dma.done.wait (%p6590_p0), [#allocation13], 40960  }
  0xa7   : > { %5993 = vsyncadd (%p6590_p0), [#allocation13], 4294926336 }
  0xa8   : > { %5995 = dma.done.wait (%p6590_p0), [#allocation16], 12288  }
  0xa9   : > { %5997 = vsyncadd (%p6590_p0), [#allocation16], 4294955008  ;;  %v619_v0 = vld [vmem:[%s536_s23] sm:$0xff]  ;;  %v620_v1 = vld [vmem:[%s536_s23 + $0x8] sm:$0xff]  ;;  %vm670_vm0 = vcmask 130048   ;;  %vm771_vm1 = vcmask 523264  }
  0xaa   : > { %621 = vxpose.xlu0.b32.start [1/2] (short) (narrow) %v619_v0, 32  ;;  %v5159_v2 = vld [vmem:[#allocation6] sm:$0xff]   ;;  %v5162_v11 = vld [vmem:[#allocation9 + $0x8] sm:$0xff]   ;;  %v5163_v12 = vld [vmem:[#allocation9] sm:$0xff]   ;;  %s6591_s19 = sld [smem:[#allocation33_spill]]  ;;  %s4543_s7 = sshll.u32 %s6298_s14, 1 }
  0xab   : > { %4987 = vmatprep.subr.bf16.mxu0 %v5159_v2  ;;  %v5160_v3 = vld [vmem:[#allocation9 + $0x18] sm:$0xff]   ;;  %v5161_v10 = vld [vmem:[#allocation9 + $0x10] sm:$0xff]   ;;  %v889_v13 = vld [vmem:[#allocation12 + $0x1c0] sm:$0xff]  ;;  %s6592_s28 = sld [smem:[#allocation25_spill]]  ;;  %s612_s23 = scalar_lea.vmem [#allocation18], %s4543_s7 }
  0xac   : > { %4988 = vmatpush3.bf16.msra.mxu0 %v5159_v2  ;;  %4993 = vmatprep.subr.bf16.mxu1 %v5160_v3  ;;  %v893_v14 = vld [vmem:[#allocation12 + $0x1e0] sm:$0xff]  ;;  %v891_v17 = vld [vmem:[#allocation12 + $0x1d0] sm:$0xff]  ;;  %v4544_v39 = vld [vmem:[#allocation8] ss:$0 sm:$0xff]  ;;  %s6593_s13 = sld [smem:[#allocation34_spill]]  ;;  %s4362_s2 = sshll.u32 %s612_s23, 4  ;;  %s4363_s2 = int_to_ptr.vmem [resolvable:$true] %s4362_s2 }
  0xad   : > { %4994 = vmatpush3.bf16.msra.mxu1 %v5160_v3  ;;  %v4611_v15 = vcombine.low %v889_v13, %v893_v14  ;;  %v4612_v16 = vcombine.high %v889_v13, %v893_v14  ;;  %v895_v18 = vld [vmem:[#allocation12 + $0x1f0] sm:$0xff]  ;;  %v881_v49 = vld [vmem:[#allocation12 + $0x180] sm:$0xff]  ;;  %s6594_s20 = sld [smem:[#allocation35_spill]]  ;;  %s4348_s1 = scalar_lea.sflag [#allocation5], %s6298_s14 }
  0xae   : > { %622 = vxpose.xlu0.b32.end [2/2] (short) (narrow) %v620_v1, 32  ;;  %4995 = vmatprep.subr.bf16.mxu1 %v5161_v10  ;;  %v4615_v19 = vcombine.low %v891_v17, %v895_v18  ;;  %v4616_v20 = vcombine.high %v891_v17, %v895_v18  ;;  %v883_v21 = vld [vmem:[#allocation12 + $0x190] sm:$0xff]  ;;  %v885_v50 = vld [vmem:[#allocation12 + $0x1a0] sm:$0xff]  ;;  %s5928_s26 = scalar_lea.vmem %s4363_s2, 32  ;;  %s6045_s16 = smov [#allocation18]  }
  0xaf   : > { %v887_v22 = vld [vmem:[#allocation12 + $0x1b0] sm:$0xff]  ;;  %v4604_v54 = vcombine.high %v881_v49, %v885_v50  ;;  %v873_v55 = vld [vmem:[#allocation12 + $0x140] sm:$0xff]  ;;  %v4603_v57 = vcombine.low %v881_v49, %v885_v50  ;;  %p5929_p1 = scmp.ne.s32.totalorder %s4363_s2, %s5928_s26 }
  0xb0   : > { %1365 = vmatprep.subr.bf16.mxu0 %v4616_v20  ;;  %v4607_v23 = vcombine.low %v883_v21, %v887_v22  ;;  %v4608_v24 = vcombine.high %v883_v21, %v887_v22  ;;  %v875_v25 = vld [vmem:[#allocation12 + $0x150] sm:$0xff]  ;;  %v877_v56 = vld [vmem:[#allocation12 + $0x160] sm:$0xff] }
  0xb1   : > { %4996 = vmatpush3.bf16.msra.mxu1 %v5161_v10  ;;  %v879_v26 = vld [vmem:[#allocation12 + $0x170] sm:$0xff]  ;;  %v4596_v58 = vcombine.high %v873_v55, %v877_v56  ;;  %v865_v59 = vld [vmem:[#allocation12 + $0x100] sm:$0xff]  ;;  %v4595_v61 = vcombine.low %v873_v55, %v877_v56  ;;  %s4977_s9 = sshll.u32 %s6592_s28, 5  ;;  %p5930_p2 = pnand %p5929_p1, %p6265_p10 }
  0xb2   : > { %4997 = vmatprep.subr.bf16.mxu1 %v5162_v11  ;;  %v4599_v27 = vcombine.low %v875_v25, %v879_v26  ;;  %v4600_v28 = vcombine.high %v875_v25, %v879_v26  ;;  %v867_v29 = vld [vmem:[#allocation12 + $0x110] sm:$0xff]  ;;  %v869_v60 = vld [vmem:[#allocation12 + $0x120] sm:$0xff] }
  0xb3   : > { %v871_v30 = vld [vmem:[#allocation12 + $0x130] sm:$0xff]  ;;  %v4588_v62 = vcombine.high %v865_v59, %v869_v60  ;;  %v857_v63 = vld [vmem:[#allocation12 + $0xc0] sm:$0xff]  ;;  %v4587_v1 = vcombine.low %v865_v59, %v869_v60  ;;  %v858_v59 = vld [vmem:[#allocation12 + $0xc8] sm:$0xff]  ;;  %s4360_s21 = scalar_lea.hbm %s6594_s20, %s4977_s9  ;;  %p5931_p7 = pneg %p5930_p2 }
  0xb4   : > { %v4591_v31 = vcombine.low %v867_v29, %v871_v30  ;;  %v4592_v32 = vcombine.high %v867_v29, %v871_v30  ;;  %v859_v33 = vld [vmem:[#allocation12 + $0xd0] sm:$0xff]  ;;  %v861_v0 = vld [vmem:[#allocation12 + $0xe0] sm:$0xff]  ;;  %v894_v29 = vld [vmem:[#allocation12 + $0x1e8] sm:$0xff] }
  0xb5   : > { %4998 = vmatpush3.bf16.msra.mxu1 %v5162_v11  ;;  %v863_v34 = vld [vmem:[#allocation12 + $0xf0] sm:$0xff]  ;;  %v4580_v2 = vcombine.high %v857_v63, %v861_v0  ;;  %v4579_v3 = vcombine.low %v857_v63, %v861_v0  ;;  %v845_v13 = vld [vmem:[#allocation12 + $0x60] sm:$0xff]  ;;  %v862_v60 = vld [vmem:[#allocation12 + $0xe8] sm:$0xff] }
  0xb6   : > { %4999 = vmatprep.subr.bf16.mxu1 %v5163_v12  ;;  %v4583_v35 = vcombine.low %v859_v33, %v863_v34  ;;  %v4584_v36 = vcombine.high %v859_v33, %v863_v34  ;;  %v833_v20 = vld [vmem:[#allocation12] sm:$0xff]  ;;  %v850_v63 = vld [vmem:[#allocation12 + $0x88] sm:$0xff] }
  0xb7   : > { %v837_v21 = vld [vmem:[#allocation12 + $0x20] sm:$0xff]  ;;  %v854_v0 = vld [vmem:[#allocation12 + $0xa8] sm:$0xff] }
  0xb8   : > { %v4556_v22 = vcombine.high %v833_v20, %v837_v21  ;;  %v4555_v25 = vcombine.low %v833_v20, %v837_v21  ;;  %v880_v20 = vld [vmem:[#allocation12 + $0x178] sm:$0xff] }
  0xb9   : > { %5000 = vmatpush3.bf16.msra.mxu1 %v5163_v12  ;;  %v841_v12 = vld [vmem:[#allocation12 + $0x40] sm:$0xff] }
  0xba   : > { %1259 = vmatprep.subr.bf16.mxu1 %v4612_v16  ;;  %v4564_v14 = vcombine.high %v841_v12, %v845_v13  ;;  %v847_v16 = vld [vmem:[#allocation12 + $0x70] sm:$0xff]  ;;  %v4563_v17 = vcombine.low %v841_v12, %v845_v13  ;;  %v896_v12 = vld [vmem:[#allocation12 + $0x1f8] sm:$0xff] }
 0x126   : > { %v637_v4 = vpop.trf.xlu0 }
 0x12a   : > { %v638_v5 = vpop.trf.xlu0 }
 0x12b   : > { %v653_v6 = vpack.c.bf16 %v638_v5, %v637_v4  ;;  %v849_v4 = vld [vmem:[#allocation12 + $0x80] sm:$0xff] }
 0x12c   : > { %v853_v5 = vld [vmem:[#allocation12 + $0xa0] sm:$0xff] }
 0x12d   : > { %4989 = vmatprep.mubr.msk.bf16.mxu0 %vm670_vm0, %v653_v6  ;;  %v4572_v6 = vcombine.high %v849_v4, %v853_v5 }
 0x12e   : > { %v639_v7 = vpop.trf.xlu0 }
 0x132   : > { %v640_v8 = vpop.trf.xlu0 }
 0x133   : > { %v654_v9 = vpack.c.bf16 %v640_v8, %v639_v7  ;;  %v851_v7 = vld [vmem:[#allocation12 + $0x90] sm:$0xff] }
 0x134   : > { %v855_v8 = vld [vmem:[#allocation12 + $0xb0] sm:$0xff] }
 0x135   : > { %4990 = vmatmul.mubr.msk.bf16.vlgmr.msra.gmra.mxu0 %vm670_vm0, %v654_v9  ;;  %v4571_v9 = vcombine.low %v849_v4, %v853_v5  ;;  %v4576_v10 = vcombine.high %v851_v7, %v855_v8  ;;  %v4575_v11 = vcombine.low %v851_v7, %v855_v8  ;;  %v846_v4 = vld [vmem:[#allocation12 + $0x68] sm:$0xff]  ;;  %v4573_v5 = vcombine.low %v850_v63, %v854_v0 }
 0x136   : > { %1366 = vmatpush1.bf16.msra.mxu0 %v4615_v19  ;;  %v834_v7 = vld [vmem:[#allocation12 + $0x8] sm:$0xff] }
 0x137   : > { %1367 = vmatprep.subr.bf16.mxu0 %v4608_v24  ;;  %v839_v24 = vld [vmem:[#allocation12 + $0x30] sm:$0xff]  ;;  %v838_v8 = vld [vmem:[#allocation12 + $0x28] sm:$0xff] }
 0x138   : > { %v4557_v13 = vcombine.low %v834_v7, %v838_v8 }
 0x13a   : > { %1368 = vmatpush1.bf16.msra.mxu0 %v4607_v23  ;;  %v835_v23 = vld [vmem:[#allocation12 + $0x10] sm:$0xff] }
 0x13b   : > { %1369 = vmatprep.subr.bf16.mxu0 %v4600_v28  ;;  %v4560_v26 = vcombine.high %v835_v23, %v839_v24  ;;  %v890_v28 = vld [vmem:[#allocation12 + $0x1c8] sm:$0xff] }
 0x13c   : > { %v4614_v30 = vcombine.high %v890_v28, %v894_v29 }
 0x13e   : > { %1370 = vmatpush1.bf16.msra.mxu0 %v4599_v27  ;;  %v4559_v27 = vcombine.low %v835_v23, %v839_v24  ;;  %v868_v23 = vld [vmem:[#allocation12 + $0x118] sm:$0xff] }
 0x13f   : > { %1371 = vmatprep.subr.bf16.mxu0 %v4592_v32  ;;  %v6043_v32 = vmov 0   ;;  %v872_v24 = vld [vmem:[#allocation12 + $0x138] sm:$0xff] }
 0x140   : > { %1397 = vmatprep.mubr.bf16.mxu0 %v6043_v32 }
 0x142   : > { %1372 = vmatpush1.bf16.msra.mxu0 %v4591_v31  ;;  %v4613_v31 = vcombine.low %v890_v28, %v894_v29  ;;  %v864_v28 = vld [vmem:[#allocation12 + $0xf8] sm:$0xff]  ;;  %v4593_v29 = vcombine.low %v868_v23, %v872_v24 }
 0x143   : > { %1373 = vmatprep.subr.bf16.mxu0 %v4584_v36 }
 0x146   : > { %1374 = vmatpush1.bf16.msra.mxu0 %v4583_v35  ;;  %v4548_v35 = vld [vmem:[#allocation11] ss:$0 sm:$0xff] }
 0x147   : > { %1375 = vmatprep.subr.bf16.mxu0 %v4576_v10  ;;  %v4558_v10 = vcombine.high %v834_v7, %v838_v8  ;;  %v5203_v7 = vld [vmem:[#allocation14 + $0x220] ss:$16 sps:$4 sm:$0xff]   ;;  %v5208_v8 = vld [vmem:[#allocation14 + $0x4] ss:$16 sps:$4 sm:$0xff]  }
 0x14a   : > { %1376 = vmatpush1.bf16.msra.mxu0 %v4575_v11  ;;  %v892_v11 = vld [vmem:[#allocation12 + $0x1d8] sm:$0xff] }
 0x1f5   : > { %v4991_v37 = vpop.f32.mrf.mxu0 }
 0x1f6   : > { %v720_v43 = vadd.f32 %v4991_v37, %v4544_v39 }
 0x1f7   : > { %v711_v38 = vpop.f32.mrf.mxu0 }
 0x1f8   : > { %v712_v41 = vadd.f32 %v4544_v39, %v711_v38  ;;  %v728_v51 = vmax.f32 %v720_v43, 0.0 }
 0x1f9   : > { %v4992_v40 = vpop.f32.mrf.mxu0 }
 0x1fa   : > { %v723_v42 = vadd.f32 %v4992_v40, %v4544_v39  ;;  %v726_v47 = vmax.f32 %v712_v41, 0.0  ;;  %v882_v40 = vld [vmem:[#allocation12 + $0x188] sm:$0xff] }
 0x1fb   : > { %v714_v44 = vpop.f32.mrf.mxu0  ;;  %v886_v41 = vld [vmem:[#allocation12 + $0x1a8] sm:$0xff] }
 0x1fc   : > { %v715_v45 = vadd.f32 %v4544_v39, %v714_v44  ;;  %v729_v46 = vmax.f32 %v723_v42, 0.0  ;;  %v4605_v50 = vcombine.low %v882_v40, %v886_v41 }
 0x1fe   : > { %v727_v48 = vmax.f32 %v715_v45, 0.0  ;;  %v731_v53 = vpack.c.bf16 %v729_v46, %v728_v51  ;;  %v4606_v46 = vcombine.high %v882_v40, %v886_v41  ;;  %v836_v40 = vld [vmem:[#allocation12 + $0x18] sm:$0xff] }
 0x1ff   : > { %v840_v41 = vld [vmem:[#allocation12 + $0x38] sm:$0xff] }
 0x200   : > { %v730_v52 = vpack.c.bf16 %v727_v48, %v726_v47  ;;  %v874_v47 = vld [vmem:[#allocation12 + $0x148] sm:$0xff] }
 0x201   : > { %v878_v48 = vld [vmem:[#allocation12 + $0x168] sm:$0xff] }
 0x202   : > { %5001 = vmatprep.mubr.msk.bf16.mxu1 %vm771_vm1, %v730_v52  ;;  %v4598_v52 = vcombine.high %v874_v47, %v878_v48  ;;  %v4597_v56 = vcombine.low %v874_v47, %v878_v48  ;;  %v5169_v47 = vld [vmem:[#allocation14 + $0x2e4] ss:$16 sps:$4 sm:$0xff]   ;;  %v5164_v48 = vld [vmem:[#allocation14 + $0xe0] ss:$16 sps:$4 sm:$0xff]  }
 0x203   : > { %5002 = vmatmul.mubr.msk.bf16.vlgmr.msra.gmra.mxu1 %vm771_vm1, %v731_v53  ;;  %v866_v53 = vld [vmem:[#allocation12 + $0x108] sm:$0xff] }
 0x204   : > { %1260 = vmatpush1.bf16.msra.mxu1 %v4611_v15  ;;  %v843_v15 = vld [vmem:[#allocation12 + $0x50] sm:$0xff]  ;;  %1291 = vmatprep.mubr.bf16.mxu1 %v6043_v32 }
 0x205   : > { %1261 = vmatprep.subr.bf16.mxu1 %v4604_v54  ;;  %v4568_v18 = vcombine.high %v843_v15, %v847_v16  ;;  %v4567_v19 = vcombine.low %v843_v15, %v847_v16  ;;  %v870_v54 = vld [vmem:[#allocation12 + $0x128] sm:$0xff]  ;;  %v884_v15 = vld [vmem:[#allocation12 + $0x198] sm:$0xff] }
 0x206   : > { %v888_v16 = vld [vmem:[#allocation12 + $0x1b8] sm:$0xff] }
 0x207   : > { %1377 = vmatprep.subr.bf16.mxu0 %v4568_v18  ;;  %v4610_v18 = vcombine.high %v884_v15, %v888_v16  ;;  %v4609_v21 = vcombine.low %v884_v15, %v888_v16  ;;  %v5215_v15 = vld [vmem:[#allocation14 + $0x3e0] ss:$16 sps:$4 sm:$0xff]   ;;  %v5220_v16 = vld [vmem:[#allocation14 + $0x1c4] ss:$16 sps:$4 sm:$0xff]  }
 0x208   : > { %1262 = vmatpush1.bf16.msra.mxu1 %v4603_v57  ;;  %1378 = vmatpush1.bf16.msra.mxu0 %v4567_v19  ;;  %v876_v19 = vld [vmem:[#allocation12 + $0x158] sm:$0xff] }
 0x209   : > { %1263 = vmatprep.subr.bf16.mxu1 %v4596_v58  ;;  %1379 = vmatprep.subr.bf16.mxu0 %v4560_v26  ;;  %v4590_v58 = vcombine.high %v866_v53, %v870_v54  ;;  %v4594_v26 = vcombine.high %v868_v23, %v872_v24  ;;  %v5227_v23 = vld [vmem:[#allocation14 + $0x3a0] ss:$16 sps:$4 sm:$0xff]   ;;  %v5232_v24 = vld [vmem:[#allocation14 + $0x184] ss:$16 sps:$4 sm:$0xff]  }
 0x20c   : > { %1264 = vmatpush1.bf16.msra.mxu1 %v4595_v61  ;;  %1380 = vmatpush1.bf16.msra.mxu0 %v4559_v27  ;;  %v4589_v61 = vcombine.low %v866_v53, %v870_v54  ;;  %v860_v27 = vld [vmem:[#allocation12 + $0xd8] sm:$0xff]  ;;  %v5173_v53 = vld [vmem:[#allocation14 + $0x2c0] ss:$16 sps:$4 sm:$0xff]  }
 0x20d   : > { %1265 = vmatprep.subr.bf16.mxu1 %v4588_v62  ;;  %v4582_v62 = vcombine.high %v858_v59, %v862_v60  ;;  %v5176_v54 = vld [vmem:[#allocation14 + $0xa0] ss:$16 sps:$4 sm:$0xff]  }
 0x210   : > { %1266 = vmatpush1.bf16.msra.mxu1 %v4587_v1  ;;  %v4581_v1 = vcombine.low %v858_v59, %v862_v60  ;;  %v5185_v59 = vld [vmem:[#allocation14 + $0x280] ss:$16 sps:$4 sm:$0xff]   ;;  %v5190_v60 = vld [vmem:[#allocation14 + $0x64] ss:$16 sps:$4 sm:$0xff]  }
 0x211   : > { %1267 = vmatprep.subr.bf16.mxu1 %v4580_v2  ;;  %v4574_v2 = vcombine.high %v850_v63, %v854_v0  ;;  %v5191_v63 = vld [vmem:[#allocation14 + $0x260] ss:$16 sps:$4 sm:$0xff]   ;;  %v5196_v0 = vld [vmem:[#allocation14 + $0x44] ss:$16 sps:$4 sm:$0xff]  }
 0x214   : > { %1268 = vmatpush1.bf16.msra.mxu1 %v4579_v3  ;;  %v842_v3 = vld [vmem:[#allocation12 + $0x48] sm:$0xff] }
 0x215   : > { %1269 = vmatprep.subr.bf16.mxu1 %v4572_v6  ;;  %v4566_v6 = vcombine.high %v842_v3, %v846_v4 }
 0x218   : > { %1270 = vmatpush1.bf16.msra.mxu1 %v4571_v9  ;;  %v4565_v9 = vcombine.low %v842_v3, %v846_v4  ;;  %v5197_v3 = vld [vmem:[#allocation14 + $0x240] ss:$16 sps:$4 sm:$0xff]   ;;  %v5202_v4 = vld [vmem:[#allocation14 + $0x24] ss:$16 sps:$4 sm:$0xff]  }
 0x219   : > { %1271 = vmatprep.subr.bf16.mxu1 %v4564_v14  ;;  %v4618_v14 = vcombine.high %v892_v11, %v896_v12 }
 0x21c   : > { %1272 = vmatpush1.bf16.msra.mxu1 %v4563_v17  ;;  %v4617_v17 = vcombine.low %v892_v11, %v896_v12  ;;  %v5209_v11 = vld [vmem:[#allocation14 + $0x200] ss:$16 sps:$4 sm:$0xff]   ;;  %v5214_v12 = vld [vmem:[#allocation14 + $0x1e4] ss:$16 sps:$4 sm:$0xff]  }
 0x21d   : > { %1273 = vmatprep.subr.bf16.mxu1 %v4556_v22  ;;  %v4602_v22 = vcombine.high %v876_v19, %v880_v20 }
 0x220   : > { %1274 = vmatpush1.bf16.msra.mxu1 %v4555_v25  ;;  %v4601_v25 = vcombine.low %v876_v19, %v880_v20  ;;  %v5221_v19 = vld [vmem:[#allocation14 + $0x3c0] ss:$16 sps:$4 sm:$0xff]   ;;  %v5226_v20 = vld [vmem:[#allocation14 + $0x1a4] ss:$16 sps:$4 sm:$0xff]  }
 0x221   : > { %1312 = vmatprep.subr.bf16.mxu1 %v4614_v30  ;;  %v4586_v30 = vcombine.high %v860_v27, %v864_v28 }
 0x2c3   : > { %v5003_v33 = vpop.f32.mrf.mxu1 }
 0x2c4   : > { %v821_v49 = vadd.f32 %v5003_v33, %v4548_v35  ;;  %v856_v33 = vld [vmem:[#allocation12 + $0xb8] sm:$0xff] }
 0x2c5   : > { %v812_v34 = vpop.f32.mrf.mxu1 }
 0x2c6   : > { %v813_v37 = vadd.f32 %v4548_v35, %v812_v34  ;;  %v829_v55 = vmax.f32 %v821_v49, 0.0  ;;  %v4585_v34 = vcombine.low %v860_v27, %v864_v28  ;;  %v5167_v49 = vld [vmem:[#allocation14 + $0x2e0] ss:$16 sps:$4 sm:$0xff]   ;;  %v5238_v28 = vld [vmem:[#allocation14 + $0x164] ss:$16 sps:$4 sm:$0xff]  }
 0x2c7   : > { %v5004_v36 = vpop.f32.mrf.mxu1  ;;  %v5233_v27 = vld [vmem:[#allocation14 + $0x380] ss:$16 sps:$4 sm:$0xff]  }
 0x2c8   : > { %v827_v42 = vmax.f32 %v813_v37, 0.0  ;;  %v824_v44 = vadd.f32 %v5004_v36, %v4548_v35  ;;  %v844_v36 = vld [vmem:[#allocation12 + $0x58] sm:$0xff] }
 0x2c9   : > { %v815_v38 = vpop.f32.mrf.mxu1  ;;  %v848_v37 = vld [vmem:[#allocation12 + $0x78] sm:$0xff] }
 0x2ca   : > { %v816_v39 = vadd.f32 %v4548_v35, %v815_v38  ;;  %v830_v51 = vmax.f32 %v824_v44, 0.0  ;;  %v4561_v44 = vcombine.low %v836_v40, %v840_v41 }
 0x2cc   : > { %v828_v43 = vmax.f32 %v816_v39, 0.0  ;;  %v6330_v57 = vpack.c.bf16 %v830_v51, %v829_v55  ;;  %v4570_v39 = vcombine.high %v844_v36, %v848_v37  ;;  %v5175_v51 = vld [vmem:[#allocation14 + $0x2c4] ss:$16 sps:$4 sm:$0xff]   ;;  %v5179_v55 = vld [vmem:[#allocation14 + $0x2a0] ss:$16 sps:$4 sm:$0xff]  }
 0x2ce   : > { %v6324_v45 = vpack.c.bf16 %v828_v43, %v827_v42  ;;  %v4569_v42 = vcombine.low %v844_v36, %v848_v37  ;;  %v4562_v43 = vcombine.high %v836_v40, %v840_v41  ;;  %v5245_v36 = vld [vmem:[#allocation14 + $0x340] ss:$16 sps:$4 sm:$0xff]   ;;  %v5250_v37 = vld [vmem:[#allocation14 + $0x124] ss:$16 sps:$4 sm:$0xff]  }
 0x2cf   : > { %v5251_v40 = vld [vmem:[#allocation14 + $0x320] ss:$16 sps:$4 sm:$0xff]  }
 0x2d0   : > { %1292 = vmatmul.mubr.bf16.vlgmr.msra.gmra.mxu1 %v6324_v45  ;;  %1398 = vmatmul.mubr.bf16.vlgmr.msra.gmra.mxu0 %v6324_v45  ;;  %v5254_v41 = vld [vmem:[#allocation14 + $0x100] ss:$16 sps:$4 sm:$0xff]  }
 0x2d1   : > { %1313 = vmatpush1.bf16.msra.mxu1 %v4613_v31  ;;  %1301 = vmatprep.mubr.bf16.mxu1 %v6043_v32  ;;  %v852_v31 = vld [vmem:[#allocation12 + $0x98] sm:$0xff] }
 0x2d2   : > { %1314 = vmatprep.subr.bf16.mxu1 %v4606_v46  ;;  %1407 = vmatprep.mubr.bf16.mxu0 %v6043_v32  ;;  %v4578_v35 = vcombine.high %v852_v31, %v856_v33  ;;  %v4577_v38 = vcombine.low %v852_v31, %v856_v33  ;;  %v5166_v46 = vld [vmem:[#allocation14 + $0xe4] ss:$16 sps:$4 sm:$0xff]   ;;  %v5239_v31 = vld [vmem:[#allocation14 + $0x360] ss:$16 sps:$4 sm:$0xff]  }
 0x2d3   : > { %3247 = vmatprep.subr.bf16.mxu0 %v5166_v46  ;;  %v5244_v33 = vld [vmem:[#allocation14 + $0x144] ss:$16 sps:$4 sm:$0xff]  }
 0x2d4   : > { %3248 = vmatpush1.bf16.msra.mxu0 %v5164_v48  ;;  %v5262_v46 = vld [vmem:[#allocation14 + $0x4e4] ss:$16 sps:$4 sm:$0xff]  }
 0x2d5   : > { %1315 = vmatpush1.bf16.msra.mxu1 %v4605_v50  ;;  %v5172_v50 = vld [vmem:[#allocation14 + $0xc4] ss:$16 sps:$4 sm:$0xff]  }
 0x2d6   : > { %1316 = vmatprep.subr.bf16.mxu1 %v4598_v52  ;;  %v5170_v52 = vld [vmem:[#allocation14 + $0xc0] ss:$16 sps:$4 sm:$0xff]   ;;  %3249 = vmatprep.subr.bf16.mxu0 %v5172_v50 }
 0x2d8   : > { %1302 = vmatmul.mubr.bf16.gmra.mxu1 %v6330_v57  ;;  %1408 = vmatmul.mubr.bf16.gmra.mxu0 %v6330_v57 }
 0x2d9   : > { %1317 = vmatpush1.bf16.msra.mxu1 %v4597_v56  ;;  %1344 = vmatprep.mubr.bf16.mxu1 %v6043_v32  ;;  %v5184_v56 = vld [vmem:[#allocation14 + $0x84] ss:$16 sps:$4 sm:$0xff]  }
 0x2da   : > { %1318 = vmatprep.subr.bf16.mxu1 %v4590_v58  ;;  %3250 = vmatpush1.bf16.msra.mxu0 %v5170_v52  ;;  %v5182_v58 = vld [vmem:[#allocation14 + $0x80] ss:$16 sps:$4 sm:$0xff]  }
 0x2dd   : > { %1319 = vmatpush1.bf16.msra.mxu1 %v4589_v61  ;;  %v5193_v61 = vld [vmem:[#allocation14 + $0x264] ss:$16 sps:$4 sm:$0xff]  }
 0x2de   : > { %1320 = vmatprep.subr.bf16.mxu1 %v4582_v62  ;;  %v5188_v62 = vld [vmem:[#allocation14 + $0x60] ss:$16 sps:$4 sm:$0xff]  }
 0x2e1   : > { %1321 = vmatpush1.bf16.msra.mxu1 %v4581_v1  ;;  %v5199_v1 = vld [vmem:[#allocation14 + $0x244] ss:$16 sps:$4 sm:$0xff]  }
 0x2e2   : > { %1322 = vmatprep.subr.bf16.mxu1 %v4574_v2  ;;  %v5194_v2 = vld [vmem:[#allocation14 + $0x40] ss:$16 sps:$4 sm:$0xff]  }
 0x2e5   : > { %1323 = vmatpush1.bf16.msra.mxu1 %v4573_v5  ;;  %v5205_v5 = vld [vmem:[#allocation14 + $0x224] ss:$16 sps:$4 sm:$0xff]  }
 0x2e6   : > { %1324 = vmatprep.subr.bf16.mxu1 %v4566_v6  ;;  %v5200_v6 = vld [vmem:[#allocation14 + $0x20] ss:$16 sps:$4 sm:$0xff]  }
 0x2e9   : > { %1325 = vmatpush1.bf16.msra.mxu1 %v4565_v9  ;;  %v5211_v9 = vld [vmem:[#allocation14 + $0x204] ss:$16 sps:$4 sm:$0xff]  }
 0x2ea   : > { %1326 = vmatprep.subr.bf16.mxu1 %v4558_v10  ;;  %v5206_v10 = vld [vmem:[#allocation14] ss:$16 sps:$4 sm:$0xff]  }
 0x2ed   : > { %1327 = vmatpush1.bf16.msra.mxu1 %v4557_v13  ;;  %v5217_v13 = vld [vmem:[#allocation14 + $0x3e4] ss:$16 sps:$4 sm:$0xff]  }
 0x2ee   : > { %1418 = vmatprep.subr.bf16.mxu1 %v4618_v14  ;;  %v5212_v14 = vld [vmem:[#allocation14 + $0x1e0] ss:$16 sps:$4 sm:$0xff]  }
 0x2f0   : > { %1345 = vmatmul.mubr.bf16.vlgmr.msra.gmra.mxu1 %v6324_v45 }
 0x2f1   : > { %1419 = vmatpush1.bf16.msra.mxu1 %v4617_v17  ;;  %1354 = vmatprep.mubr.bf16.mxu1 %v6043_v32  ;;  %v5223_v17 = vld [vmem:[#allocation14 + $0x3c4] ss:$16 sps:$4 sm:$0xff]  }
 0x2f2   : > { %1420 = vmatprep.subr.bf16.mxu1 %v4610_v18  ;;  %v5218_v18 = vld [vmem:[#allocation14 + $0x1c0] ss:$16 sps:$4 sm:$0xff]  }
 0x2f5   : > { %1421 = vmatpush1.bf16.msra.mxu1 %v4609_v21  ;;  %v5229_v21 = vld [vmem:[#allocation14 + $0x3a4] ss:$16 sps:$4 sm:$0xff]  }
 0x2f6   : > { %1422 = vmatprep.subr.bf16.mxu1 %v4602_v22  ;;  %v5224_v22 = vld [vmem:[#allocation14 + $0x1a0] ss:$16 sps:$4 sm:$0xff]  }
 0x2f8   : > { %1355 = vmatmul.mubr.bf16.gmra.mxu1 %v6330_v57 }
 0x2f9   : > { %1423 = vmatpush1.bf16.msra.mxu1 %v4601_v25  ;;  %1450 = vmatprep.mubr.bf16.mxu1 %v6043_v32  ;;  %v5235_v25 = vld [vmem:[#allocation14 + $0x384] ss:$16 sps:$4 sm:$0xff]  }
 0x2fa   : > { %1424 = vmatprep.subr.bf16.mxu1 %v4594_v26  ;;  %v5230_v26 = vld [vmem:[#allocation14 + $0x180] ss:$16 sps:$4 sm:$0xff]  }
 0x2fd   : > { %1425 = vmatpush1.bf16.msra.mxu1 %v4593_v29  ;;  %v5241_v29 = vld [vmem:[#allocation14 + $0x364] ss:$16 sps:$4 sm:$0xff]  }
 0x2fe   : > { %1426 = vmatprep.subr.bf16.mxu1 %v4586_v30  ;;  %v5236_v30 = vld [vmem:[#allocation14 + $0x160] ss:$16 sps:$4 sm:$0xff]  }
 0x301   : > { %1427 = vmatpush1.bf16.msra.mxu1 %v4585_v34  ;;  %v5247_v34 = vld [vmem:[#allocation14 + $0x344] ss:$16 sps:$4 sm:$0xff]  }
 0x302   : > { %1428 = vmatprep.subr.bf16.mxu1 %v4578_v35  ;;  %v5242_v35 = vld [vmem:[#allocation14 + $0x140] ss:$16 sps:$4 sm:$0xff]  }
 0x305   : > { %1429 = vmatpush1.bf16.msra.mxu1 %v4577_v38  ;;  %v5253_v38 = vld [vmem:[#allocation14 + $0x324] ss:$16 sps:$4 sm:$0xff]  }
 0x306   : > { %1430 = vmatprep.subr.bf16.mxu1 %v4570_v39  ;;  %v5248_v39 = vld [vmem:[#allocation14 + $0x120] ss:$16 sps:$4 sm:$0xff]  }
 0x309   : > { %1431 = vmatpush1.bf16.msra.mxu1 %v4569_v42  ;;  %v5256_v42 = vld [vmem:[#allocation14 + $0x104] ss:$16 sps:$4 sm:$0xff]  }
 0x30a   : > { %1432 = vmatprep.subr.bf16.mxu1 %v4562_v43  ;;  %v5257_v43 = vld [vmem:[#allocation14 + $0x300] ss:$16 sps:$4 sm:$0xff]  }
 0x30d   : > { %1433 = vmatpush1.bf16.msra.mxu1 %v4561_v44  ;;  %v5259_v44 = vld [vmem:[#allocation14 + $0x304] ss:$16 sps:$4 sm:$0xff]  }
 0x30e   : > { %3288 = vmatprep.subr.bf16.mxu1 %v5169_v47  ;;  %v5265_v47 = vld [vmem:[#allocation14 + $0x6e4] ss:$16 sps:$4 sm:$0xff]  }
 0x310   : > { %1451 = vmatmul.mubr.bf16.vlgmr.msra.gmra.mxu1 %v6324_v45  ;;  %v5178_v45 = vld [vmem:[#allocation14 + $0xa4] ss:$16 sps:$4 sm:$0xff]  }
 0x311   : > { %1460 = vmatprep.mubr.bf16.mxu1 %v6043_v32  ;;  %3289 = vmatpush1.bf16.msra.mxu1 %v5167_v49  ;;  %v5181_v32 = vld [vmem:[#allocation14 + $0x2a4] ss:$16 sps:$4 sm:$0xff]  }
 0x312   : > { %3290 = vmatprep.subr.bf16.mxu1 %v5175_v51  ;;  %3251 = vmatprep.subr.bf16.mxu0 %v5178_v45 }
 0x313   : > { %3252 = vmatpush1.bf16.msra.mxu0 %v5176_v54 }
 0x314   : > { %3253 = vmatprep.subr.bf16.mxu0 %v5184_v56  ;;  %v899_v56 = vlaneseq }
 0x315   : > { %3291 = vmatpush1.bf16.msra.mxu1 %v5173_v53 }
 0x316   : > { %3292 = vmatprep.subr.bf16.mxu1 %v5181_v32  ;;  %vm4344_vm2 = vcmp.lt.s32.totalorder %v899_v56, 256 }
 0x317   : > { %3254 = vmatpush1.bf16.msra.mxu0 %v5182_v58 }
 0x318   : > { %1461 = vmatmul.mubr.bf16.gmra.mxu1 %v6330_v57  ;;  %v5187_v57 = vld [vmem:[#allocation14 + $0x284] ss:$16 sps:$4 sm:$0xff]   ;;  %3255 = vmatprep.subr.bf16.mxu0 %v5190_v60  ;;  %v6345_v60 = vshrl.u32 %v899_v56, 7 }
 0x319   : > { %3293 = vmatpush1.bf16.msra.mxu1 %v5179_v55 }
 0x31a   : > { %3294 = vmatprep.subr.bf16.mxu1 %v5187_v57 }
 0x31b   : > { %3256 = vmatpush1.bf16.msra.mxu0 %v5188_v62 }
 0x31c   : > { %3257 = vmatprep.subr.bf16.mxu0 %v5196_v0  ;;  %v6348_v0 = vsub.s32 0, %v6345_v60 }
 0x31d   : > { %3295 = vmatpush1.bf16.msra.mxu1 %v5185_v59 }
 0x31e   : > { %3296 = vmatprep.subr.bf16.mxu1 %v5193_v61 }
 0x31f   : > { %3258 = vmatpush1.bf16.msra.mxu0 %v5194_v2  ;;  %v6352_v2 = vsub.s32 1, %v6345_v60 }
 0x320   : > { %3259 = vmatprep.subr.bf16.mxu0 %v5202_v4  ;;  %v921_v4 = vsub.s32 5, %v6345_v60 }
 0x321   : > { %3297 = vmatpush1.bf16.msra.mxu1 %v5191_v63 }
 0x322   : > { %3298 = vmatprep.subr.bf16.mxu1 %v5199_v1  ;;  %v917_v1 = vsub.s32 4, %v6345_v60 }
 0x323   : > { %3260 = vmatpush1.bf16.msra.mxu0 %v5200_v6 }
 0x324   : > { %3261 = vmatprep.subr.bf16.mxu0 %v5208_v8 }
 0x325   : > { %3299 = vmatpush1.bf16.msra.mxu1 %v5197_v3  ;;  %v6357_v3 = vld [vmem:[%s6542_s6] sm:$0xff] }
 0x326   : > { %3300 = vmatprep.subr.bf16.mxu1 %v5205_v5  ;;  %v918_v8 = vrot.slane %v6357_v3, %v917_v1 }
 0x327   : > { %3262 = vmatpush1.bf16.msra.mxu0 %v5206_v10 }
 0x328   : > { %3263 = vmatprep.subr.bf16.mxu0 %v5214_v12  ;;  %v6371_v12 = vsub.s32 3, %v6345_v60 }
 0x329   : > { %3301 = vmatpush1.bf16.msra.mxu1 %v5203_v7  ;;  %v902_v7 = vrot.slane %v6357_v3, %v6348_v0 }
 0x32a   : > { %3302 = vmatprep.subr.bf16.mxu1 %v5211_v9  ;;  %v906_v9 = vrot.slane %v6357_v3, %v6352_v2 }
 0x32b   : > { %3264 = vmatpush2.bf16.msra.mxu0 %v5212_v14  ;;  %v6374_v14 = vsub.s32 2, %v6345_v60 }
 0x32c   : > { %3265 = vmatprep.subr.bf16.mxu0 %v5220_v16 }
 0x32d   : > { %3303 = vmatpush1.bf16.msra.mxu1 %v5209_v11  ;;  %v922_v11 = vrot.slane %v6357_v3, %v921_v4 }
 0x32e   : > { %3304 = vmatprep.subr.bf16.mxu1 %v5217_v13 }
 0x32f   : > { %3266 = vmatpush2.bf16.msra.mxu0 %v5218_v18 }
 0x330   : > { %3267 = vmatprep.subr.bf16.mxu0 %v5226_v20  ;;  %v914_v20 = vrot.slane %v6357_v3, %v6371_v12 }
 0x331   : > { %3305 = vmatpush2.bf16.msra.mxu1 %v5215_v15 }
 0x332   : > { %3306 = vmatprep.subr.bf16.mxu1 %v5223_v17 }
 0x333   : > { %3268 = vmatpush2.bf16.msra.mxu0 %v5224_v22 }
 0x334   : > { %3269 = vmatprep.subr.bf16.mxu0 %v5232_v24 }
 0x335   : > { %3307 = vmatpush2.bf16.msra.mxu1 %v5221_v19 }
 0x336   : > { %3308 = vmatprep.subr.bf16.mxu1 %v5229_v21 }
 0x337   : > { %3270 = vmatpush2.bf16.msra.mxu0 %v5230_v26 }
 0x338   : > { %3271 = vmatprep.subr.bf16.mxu0 %v5238_v28 }
 0x339   : > { %3309 = vmatpush2.bf16.msra.mxu1 %v5227_v23 }
 0x33a   : > { %3310 = vmatprep.subr.bf16.mxu1 %v5235_v25  ;;  %v910_v25 = vrot.slane %v6357_v3, %v6374_v14 }
 0x33b   : > { %3272 = vmatpush2.bf16.msra.mxu0 %v5236_v30 }
 0x33c   : > { %3273 = vmatprep.subr.bf16.mxu0 %v5244_v33 }
 0x33d   : > { %3311 = vmatpush2.bf16.msra.mxu1 %v5233_v27 }
 0x33e   : > { %3312 = vmatprep.subr.bf16.mxu1 %v5241_v29 }
 0x33f   : > { %3274 = vmatpush2.bf16.msra.mxu0 %v5242_v35 }
 0x340   : > { %3275 = vmatprep.subr.bf16.mxu0 %v5250_v37 }
 0x341   : > { %3313 = vmatpush2.bf16.msra.mxu1 %v5239_v31 }
 0x342   : > { %3314 = vmatprep.subr.bf16.mxu1 %v5247_v34 }
 0x343   : > { %3276 = vmatpush2.bf16.msra.mxu0 %v5248_v39 }
 0x344   : > { %3277 = vmatprep.subr.bf16.mxu0 %v5256_v42 }
 0x345   : > { %3315 = vmatpush2.bf16.msra.mxu1 %v5245_v36 }
 0x346   : > { %3316 = vmatprep.subr.bf16.mxu1 %v5253_v38 }
 0x347   : > { %3278 = vmatpush2.bf16.msra.mxu0 %v5254_v41 }
 0x348   : > { %3329 = vmatprep.subr.bf16.mxu0 %v5262_v46 }
 0x349   : > { %3317 = vmatpush2.bf16.msra.mxu1 %v5251_v40 }
 0x34a   : > { %3318 = vmatprep.subr.bf16.mxu1 %v5259_v44 }
 0x34d   : > { %3319 = vmatpush2.bf16.msra.mxu1 %v5257_v43 }
 0x34e   : > { %3370 = vmatprep.subr.bf16.mxu1 %v5265_v47 }
 0x390   : > { %v1293_v48 = vpop.f32.mrf.mxu1  ;;  %v1399_v45 = vpop.f32.mrf.mxu0 }
 0x391   : > { %v1294_v15 = vadd.f32 %v1293_v48, %v902_v7  ;;  %v1400_v16 = vadd.f32 %v1399_v45, %v918_v8 }
 0x392   : > { %v1295_v49 = vpop.f32.mrf.mxu1  ;;  %v1401_v54 = vpop.f32.mrf.mxu0 }
 0x393   : > { %v1296_v17 = vadd.f32 %v1295_v49, %v906_v9  ;;  %v1402_v19 = vadd.f32 %v1401_v54, %v922_v11  ;;  %v1471_v27 = vmax.f32 %v1294_v15, 0.0  ;;  %v1475_v28 = vmax.f32 %v1400_v16, 0.0 }
 0x394   : > { %v1297_v50 = vpop.f32.mrf.mxu1  ;;  %v1403_v58 = vpop.f32.mrf.mxu0 }
 0x395   : > { %v1298_v21 = vadd.f32 %v1297_v50, %v902_v7  ;;  %v1404_v22 = vadd.f32 %v1403_v58, %v918_v8  ;;  %v1472_v29 = vmax.f32 %v1296_v17, 0.0  ;;  %v1476_v33 = vmax.f32 %v1402_v19, 0.0 }
 0x396   : > { %v1299_v51 = vpop.f32.mrf.mxu1  ;;  %v1405_v62 = vpop.f32.mrf.mxu0 }
 0x397   : > { %v1300_v23 = vadd.f32 %v1299_v51, %v906_v9  ;;  %v1406_v30 = vadd.f32 %v1405_v62, %v922_v11  ;;  %v1479_v37 = vmax.f32 %v1298_v21, 0.0  ;;  %v1483_v38 = vmax.f32 %v1404_v22, 0.0 }
 0x398   : > { %v1303_v52 = vpop.f32.mrf.mxu1  ;;  %v1409_v6 = vpop.f32.mrf.mxu0 }
 0x399   : > { %v1480_v39 = vmax.f32 %v1300_v23, 0.0  ;;  %v1484_v47 = vmax.f32 %v1406_v30, 0.0  ;;  %v1304_v48 = vadd.f32 %v1303_v52, %v902_v7 }
 0x39a   : > { %v1305_v53 = vpop.f32.mrf.mxu1  ;;  %v1411_v13 = vpop.f32.mrf.mxu0 }
 0x39b   : > { %v1306_v40 = vadd.f32 %v1305_v53, %v906_v9  ;;  %v1412_v49 = vadd.f32 %v1411_v13, %v922_v11  ;;  %v1512_v16 = vmax.f32 %v1472_v29, %v1480_v39  ;;  %v1548_v21 = vmax.f32 %v1476_v33, %v1484_v47 }
 0x39c   : > { %v6342_v32 = vpop.f32.mrf.mxu1  ;;  %v1413_v24 = vpop.f32.mrf.mxu0 }
 0x39d   : > { %v1308_v62 = vadd.f32 %v6342_v32, %v902_v7  ;;  %v1492_v17 = vmax.f32 %v1412_v49, 0.0  ;;  %v1414_v19 = vadd.f32 %v1413_v24, %v918_v8 }
 0x39e   : > { %v1309_v55 = vpop.f32.mrf.mxu1  ;;  %v1415_v41 = vpop.f32.mrf.mxu0 }
 0x39f   : > { %v1310_v50 = vadd.f32 %v1309_v55, %v906_v9  ;;  %v1495_v22 = vmax.f32 %v1308_v62, 0.0  ;;  %v1549_v29 = vmax.f32 %v1548_v21, %v1492_v17  ;;  %v1499_v30 = vmax.f32 %v1414_v19, 0.0 }
 0x3a1   : > { %v1496_v52 = vmax.f32 %v1310_v50, 0.0 }
 0x3b0   : > { %v1346_v57 = vpop.f32.mrf.mxu1 }
 0x3b1   : > { %v1347_v42 = vadd.f32 %v1346_v57, %v910_v25 }
 0x3b2   : > { %v1348_v59 = vpop.f32.mrf.mxu1 }
 0x3b3   : > { %v1349_v34 = vadd.f32 %v1348_v59, %v914_v20  ;;  %v1410_v59 = vadd.f32 %v1409_v6, %v918_v8 }
 0x3b4   : > { %v1350_v61 = vpop.f32.mrf.mxu1 }
 0x3b5   : > { %v1351_v35 = vadd.f32 %v1350_v61, %v910_v25  ;;  %v1474_v51 = vmax.f32 %v1349_v34, 0.0  ;;  %v1488_v61 = vmax.f32 %v1306_v40, 0.0  ;;  %v929_v34 = vsub.s32 7, %v6345_v60 }
 0x3b6   : > { %v1352_v63 = vpop.f32.mrf.mxu1 }
 0x3b7   : > { %v1353_v26 = vadd.f32 %v1352_v63, %v914_v20  ;;  %v1481_v45 = vmax.f32 %v1351_v35, 0.0  ;;  %v1416_v63 = vadd.f32 %v1415_v41, %v922_v11  ;;  %v1513_v6 = vmax.f32 %v1512_v16, %v1488_v61 }
 0x3b8   : > { %v1356_v5 = vpop.f32.mrf.mxu1  ;;  %v1539_v11 = vmax.f32 %v1475_v28, %v1483_v38 }
 0x3b9   : > { %v1482_v43 = vmax.f32 %v1353_v26, 0.0  ;;  %v1357_v44 = vadd.f32 %v1356_v5, %v910_v25  ;;  %v1487_v5 = vmax.f32 %v1304_v48, 0.0  ;;  %v1500_v23 = vmax.f32 %v1416_v63, 0.0 }
 0x3ba   : > { %v1358_v10 = vpop.f32.mrf.mxu1  ;;  %v925_v26 = vsub.s32 6, %v6345_v60 }
 0x3bb   : > { %v1359_v36 = vadd.f32 %v1358_v10, %v914_v20  ;;  %v1473_v10 = vmax.f32 %v1347_v42, 0.0  ;;  %v1530_v53 = vmax.f32 %v1474_v51, %v1482_v43  ;;  %v1489_v15 = vmax.f32 %v1357_v44, 0.0 }
 0x3bc   : > { %v1360_v18 = vpop.f32.mrf.mxu1  ;;  %v1550_v33 = vmax.f32 %v1549_v29, %v1500_v23  ;;  %v926_v39 = vrot.slane %v6357_v3, %v925_v26  ;;  %v930_v42 = vrot.slane %v6357_v3, %v929_v34 }
 0x3bd   : > { %v1490_v54 = vmax.f32 %v1359_v36, 0.0  ;;  %v1361_v58 = vadd.f32 %v1360_v18, %v910_v25  ;;  %v1521_v13 = vmax.f32 %v1473_v10, %v1481_v45  ;;  %v1491_v18 = vmax.f32 %v1410_v59, 0.0 }
 0x3be   : > { %v1362_v31 = vpop.f32.mrf.mxu1 }
 0x3bf   : > { %v1363_v46 = vadd.f32 %v1362_v31, %v914_v20  ;;  %v1531_v55 = vmax.f32 %v1530_v53, %v1490_v54  ;;  %v1497_v9 = vmax.f32 %v1361_v58, 0.0  ;;  %v1503_v20 = vmax.f32 %v1471_v27, %v1479_v37 }
 0x3c0   : > { %v1522_v32 = vmax.f32 %v1521_v13, %v1489_v15  ;;  %v1514_v31 = vmax.f32 %v1513_v6, %v1496_v52  ;;  %v1540_v35 = vmax.f32 %v1539_v11, %v1491_v18 }
 0x3c1   : > { %v1498_v57 = vmax.f32 %v1363_v46, 0.0  ;;  %v1504_v25 = vmax.f32 %v1503_v20, %v1487_v5  ;;  %v1551_v46 = vrot.slane %v1550_v33, 4 }
 0x3c2   : > { %v1523_v8 = vmax.f32 %v1522_v32, %v1497_v9  ;;  %v1541_v28 = vmax.f32 %v1540_v35, %v1499_v30  ;;  %v1515_v38 = vrot.slane %v1514_v31, 4 }
 0x3c3   : > { %v1532_v7 = vmax.f32 %v1531_v55, %v1498_v57  ;;  %v1505_v27 = vmax.f32 %v1504_v25, %v1495_v22  ;;  %v1552_v10 = vmax.f32 %v1550_v33, %v1551_v46 }
 0x3c4   : > { %v1524_v40 = vrot.slane %v1523_v8, 4  ;;  %v1542_v51 = vrot.slane %v1541_v28, 4  ;;  %v1516_v45 = vmax.f32 %v1514_v31, %v1515_v38  ;;  %v6044_v38 = vmov 1966171168  }
 0x3c5   : > { %v1533_v36 = vrot.slane %v1532_v7, 4  ;;  %v1506_v44 = vrot.slane %v1505_v27, 4  ;;  %v1553_v6 = vrot.slane %v1552_v10, 2 }
 0x3c6   : > { %v1525_v54 = vmax.f32 %v1523_v8, %v1524_v40  ;;  %v1543_v17 = vmax.f32 %v1541_v28, %v1542_v51  ;;  %v1517_v19 = vrot.slane %v1516_v45, 2  ;;  %v1589_v40 = vunpack.c.l.s4 %v6044_v38  ;;  %v5266_v38 = vld [vmem:[#allocation14 + $0x4c0] ss:$16 sps:$4 sm:$0xff]  }
 0x3c7   : > { %v1534_v47 = vmax.f32 %v1532_v7, %v1533_v36  ;;  %v1507_v63 = vmax.f32 %v1505_v27, %v1506_v44  ;;  %v1554_v33 = vmax.f32 %v1552_v10, %v1553_v6 }
 0x3c8   : > { %v1526_v52 = vrot.slane %v1525_v54, 2  ;;  %v1544_v29 = vrot.slane %v1543_v17, 2  ;;  %v1518_v30 = vmax.f32 %v1516_v45, %v1517_v19  ;;  %v1590_v45 = vunpack.c.0.s8 %v1589_v40  ;;  %v5269_v40 = vld [vmem:[#allocation14 + $0x6c0] ss:$16 sps:$4 sm:$0xff]  }
 0x3c9   : > { %v1535_v53 = vrot.slane %v1534_v47, 2  ;;  %v1508_v18 = vrot.slane %v1507_v63, 2 }
 0x3ca   : > { %v1527_v31 = vmax.f32 %v1525_v54, %v1526_v52 }
 0x3cb   : > { %v1536_v22 = vmax.f32 %v1534_v47, %v1535_v53  ;;  %v1509_v27 = vmax.f32 %v1507_v63, %v1508_v18 }
 0x3cd   : > { %v1537_v36 = vrot.slane %v1536_v22, 1  ;;  %v1510_v47 = vrot.slane %v1509_v27, 1 }
 0x3d0   : > { %v1452_v24 = vpop.f32.mrf.mxu1 }
 0x3d1   : > { %v1453_v49 = vadd.f32 %v1452_v24, %v926_v39 }
 0x3d2   : > { %v1454_v37 = vpop.f32.mrf.mxu1 }
 0x3d3   : > { %v1455_v59 = vadd.f32 %v1454_v37, %v930_v42  ;;  %v1477_v57 = vmax.f32 %v1453_v49, 0.0 }
 0x3d4   : > { %v1456_v41 = vpop.f32.mrf.mxu1 }
 0x3d5   : > { %v1457_v43 = vadd.f32 %v1456_v41, %v926_v39  ;;  %v1478_v55 = vmax.f32 %v1455_v59, 0.0  ;;  %v1519_v41 = vrot.slane %v1518_v30, 1 }
 0x3d6   : > { %v1458_v48 = vpop.f32.mrf.mxu1 }
 0x3d7   : > { %v1459_v50 = vadd.f32 %v1458_v48, %v930_v42  ;;  %v1485_v61 = vmax.f32 %v1457_v43, 0.0  ;;  %v1528_v43 = vrot.slane %v1527_v31, 1  ;;  %v1538_v48 = vmax.f32 %v1536_v22, %v1537_v36 }
 0x3d8   : > { %v1462_v58 = vpop.f32.mrf.mxu1  ;;  %v1520_v54 = vmax.f32 %v1518_v30, %v1519_v41  ;;  %v5274_v41 = vld [vmem:[#allocation14 + $0x4a4] ss:$16 sps:$4 sm:$0xff]  }
 0x3d9   : > { %v1463_v62 = vadd.f32 %v1462_v58, %v926_v39  ;;  %v1486_v3 = vmax.f32 %v1459_v50, 0.0  ;;  %v1557_v9 = vmax.f32 %v1477_v57, %v1485_v61  ;;  %v1529_v58 = vmax.f32 %v1527_v31, %v1528_v43  ;;  %v5277_v43 = vld [vmem:[#allocation14 + $0x6a4] ss:$16 sps:$4 sm:$0xff]  }
 0x3da   : > { %v1464_v15 = vpop.f32.mrf.mxu1 }
 0x3db   : > { %v1493_v16 = vmax.f32 %v1463_v62, 0.0  ;;  %v1465_v5 = vadd.f32 %v1464_v15, %v930_v42  ;;  %v1566_v32 = vmax.f32 %v1478_v55, %v1486_v3  ;;  %v1511_v62 = vmax.f32 %v1509_v27, %v1510_v47  ;;  %v5260_v27 = vld [vmem:[#allocation14 + $0x4e0] ss:$16 sps:$4 sm:$0xff]   ;;  %v5280_v47 = vld [vmem:[#allocation14 + $0x484] ss:$16 sps:$4 sm:$0xff]  }
 0x3dc   : > { %v1466_v13 = vpop.f32.mrf.mxu1  ;;  %v1585_v10 = vcombine.low %v1529_v58, %v1538_v48  ;;  %v5278_v48 = vld [vmem:[#allocation14 + $0x480] ss:$16 sps:$4 sm:$0xff]   ;;  %v5292_v58 = vld [vmem:[#allocation14 + $0x444] ss:$16 sps:$4 sm:$0xff]  }
 0x3dd   : > { %v1494_v20 = vmax.f32 %v1465_v5, 0.0  ;;  %v1467_v21 = vadd.f32 %v1466_v13, %v926_v39  ;;  %v1558_v7 = vmax.f32 %v1557_v9, %v1493_v16  ;;  %v1545_v39 = vmax.f32 %v1543_v17, %v1544_v29 }
 0x3de   : > { %v1468_v23 = vpop.f32.mrf.mxu1  ;;  %v1584_v3 = vcombine.low %v1511_v62, %v1520_v54  ;;  %v6390_v16 = vsub.s32 %v1590_v45, %v6345_v60  ;;  %v5284_v45 = vld [vmem:[#allocation14 + $0x460] ss:$16 sps:$4 sm:$0xff]   ;;  %v5362_v60 = vld [vmem:[#allocation14 + $0xc8] ss:$16 sps:$4 sm:$0xff]  }
 0x3df   : > { %v1501_v11 = vmax.f32 %v1467_v21, 0.0  ;;  %v1469_v25 = vadd.f32 %v1468_v23, %v930_v42  ;;  %v1567_v8 = vmax.f32 %v1566_v32, %v1494_v20  ;;  %v1555_v42 = vrot.slane %v1554_v33, 1  ;;  %v5287_v54 = vld [vmem:[#allocation14 + $0x660] ss:$16 sps:$4 sm:$0xff]  }
 0x3e0   : > { %v1546_v51 = vrot.slane %v1545_v39, 1  ;;  %v1601_v19 = vrot.slane %v1585_v10, %v6390_v16  ;;  %v1594_v55 = vrot.slane %v1584_v3, %v6390_v16  ;;  %v5293_v62 = vld [vmem:[#allocation14 + $0x640] ss:$16 sps:$4 sm:$0xff]   ;;  %v5301_v10 = vld [vmem:[#allocation14 + $0x624] ss:$16 sps:$4 sm:$0xff]  }
 0x3e1   : > { %v1559_v24 = vmax.f32 %v1558_v7, %v1501_v11  ;;  %v1502_v35 = vmax.f32 %v1469_v25, 0.0  ;;  %v1556_v63 = vmax.f32 %v1554_v33, %v1555_v42  ;;  %v5263_v33 = vld [vmem:[#allocation14 + $0x6e0] ss:$16 sps:$4 sm:$0xff]   ;;  %v5283_v42 = vld [vmem:[#allocation14 + $0x684] ss:$16 sps:$4 sm:$0xff]  }
 0x3e2   : > { %v1547_v57 = vmax.f32 %v1545_v39, %v1546_v51  ;;  %v1616_v21 = vcombine.low %v1594_v55, %v1601_v19  ;;  %v5289_v51 = vld [vmem:[#allocation14 + $0x664] ss:$16 sps:$4 sm:$0xff]   ;;  %v5311_v55 = vld [vmem:[#allocation14 + $0x7e0] ss:$16 sps:$4 sm:$0xff]  }
 0x3e3   : > { %v1560_v37 = vrot.slane %v1559_v24, 4  ;;  %v1568_v28 = vmax.f32 %v1567_v8, %v1502_v35  ;;  %v5307_v3 = vld [vmem:[#allocation14 + $0x604] ss:$16 sps:$4 sm:$0xff]  }
 0x3e4   : > { %v1586_v17 = vcombine.low %v1547_v57, %v1556_v63  ;;  %v1624_v22 = vrot.slane %v1616_v21, %v6390_v16  ;;  %v5298_v63 = vld [vmem:[#allocation14 + $0x424] ss:$16 sps:$4 sm:$0xff]   ;;  %v5314_v21 = vld [vmem:[#allocation14 + $0x5c0] ss:$16 sps:$4 sm:$0xff]  }
 0x3e5   : > { %v1561_v44 = vmax.f32 %v1559_v24, %v1560_v37  ;;  %v1569_v46 = vrot.slane %v1568_v28, 4  ;;  %v5304_v57 = vld [vmem:[#allocation14 + $0x404] ss:$16 sps:$4 sm:$0xff]  }
 0x3e6   : > { %v1608_v20 = vrot.slane %v1586_v17, %v6390_v16  ;;  %v5305_v17 = vld [vmem:[#allocation14 + $0x600] ss:$16 sps:$4 sm:$0xff]   ;;  %v5310_v19 = vld [vmem:[#allocation14 + $0x5e4] ss:$16 sps:$4 sm:$0xff]  }
 0x3e7   : > { %v1562_v49 = vrot.slane %v1561_v44, 2  ;;  %v1570_v50 = vmax.f32 %v1568_v28, %v1569_v46  ;;  %v5268_v28 = vld [vmem:[#allocation14 + $0x4c4] ss:$16 sps:$4 sm:$0xff]   ;;  %v5275_v46 = vld [vmem:[#allocation14 + $0x6a0] ss:$16 sps:$4 sm:$0xff]  }
 0x3e9   : > { %v1563_v59 = vmax.f32 %v1561_v44, %v1562_v49  ;;  %v1571_v61 = vrot.slane %v1570_v50, 2  ;;  %v5272_v44 = vld [vmem:[#allocation14 + $0x4a0] ss:$16 sps:$4 sm:$0xff]  }
 0x3ea   : > { %v5281_v49 = vld [vmem:[#allocation14 + $0x680] ss:$16 sps:$4 sm:$0xff]  }
 0x3eb   : > { %v1564_v53 = vrot.slane %v1563_v59, 1  ;;  %v1572_v15 = vmax.f32 %v1570_v50, %v1571_v61  ;;  %v5286_v50 = vld [vmem:[#allocation14 + $0x464] ss:$16 sps:$4 sm:$0xff]   ;;  %v5290_v61 = vld [vmem:[#allocation14 + $0x440] ss:$16 sps:$4 sm:$0xff]  }
 0x3ed   : > { %v1573_v5 = vrot.slane %v1572_v15, 1  ;;  %v1565_v52 = vmax.f32 %v1563_v59, %v1564_v53  ;;  %v5295_v59 = vld [vmem:[#allocation14 + $0x644] ss:$16 sps:$4 sm:$0xff]   ;;  %v5296_v53 = vld [vmem:[#allocation14 + $0x420] ss:$16 sps:$4 sm:$0xff]  }
 0x3ef   : > { %v1574_v13 = vmax.f32 %v1572_v15, %v1573_v5  ;;  %v5299_v15 = vld [vmem:[#allocation14 + $0x620] ss:$16 sps:$4 sm:$0xff]  }
 0x3f0   : > { %v5302_v5 = vld [vmem:[#allocation14 + $0x400] ss:$16 sps:$4 sm:$0xff]  }
 0x3f1   : > { %v1587_v9 = vcombine.low %v1565_v52, %v1574_v13  ;;  %v5313_v52 = vld [vmem:[#allocation14 + $0x7e4] ss:$16 sps:$4 sm:$0xff]   ;;  %v5308_v13 = vld [vmem:[#allocation14 + $0x5e0] ss:$16 sps:$4 sm:$0xff]  }
 0x3f3   : > { %v1615_v18 = vrot.slane %v1587_v9, %v6390_v16  ;;  %v5316_v9 = vld [vmem:[#allocation14 + $0x5c4] ss:$16 sps:$4 sm:$0xff]  }
 0x3f5   : > { %v1617_v6 = vcombine.low %v1608_v20, %v1615_v18  ;;  %v5319_v20 = vld [vmem:[#allocation14 + $0x7c4] ss:$16 sps:$4 sm:$0xff]   ;;  %v5317_v18 = vld [vmem:[#allocation14 + $0x7c0] ss:$16 sps:$4 sm:$0xff]  }
 0x3f7   : > { %v1631_v23 = vrot.slane %v1617_v6, %v6390_v16  ;;  %v5322_v6 = vld [vmem:[#allocation14 + $0x5a4] ss:$16 sps:$4 sm:$0xff]  }
 0x3f9   : > { %v1632_v32 = vcombine.low %v1624_v22, %v1631_v23  ;;  %v5325_v22 = vld [vmem:[#allocation14 + $0x7a4] ss:$16 sps:$4 sm:$0xff]   ;;  %v5320_v23 = vld [vmem:[#allocation14 + $0x5a0] ss:$16 sps:$4 sm:$0xff]  }
 0x3fb   : > { %v6398_v7 = vmax.f32 %v1632_v32, 0.0  ;;  %v5323_v32 = vld [vmem:[#allocation14 + $0x7a0] ss:$16 sps:$4 sm:$0xff]  }
 0x3fd   : > { %v1648_v11 = vrot.slane %v6398_v7, %v6352_v2  ;;  %v1656_v25 = vrot.slane %v6398_v7, %v6371_v12  ;;  %v1644_v29 = vrot.slane %v6398_v7, %v6348_v0  ;;  %v1652_v30 = vrot.slane %v6398_v7, %v6374_v14 }
 0x3fe   : > { %v1664_v31 = vrot.slane %v6398_v7, %v921_v4  ;;  %v1672_v8 = vrot.slane %v6398_v7, %v929_v34  ;;  %v5271_v4 = vld [vmem:[#allocation14 + $0x6c4] ss:$16 sps:$4 sm:$0xff]  }
 0x3ff   : > { %v6414_v24 = vpack.c.bf16 %v1648_v11, %v1648_v11  ;;  %v6416_v35 = vpack.c.bf16 %v1656_v25, %v1656_v25  ;;  %v6418_v36 = vpack.c.bf16 %v1644_v29, %v1644_v29  ;;  %v6420_v37 = vpack.c.bf16 %v1652_v30, %v1652_v30  ;;  %v5328_v11 = vld [vmem:[#allocation14 + $0x584] ss:$16 sps:$4 sm:$0xff]   ;;  %v5326_v29 = vld [vmem:[#allocation14 + $0x580] ss:$16 sps:$4 sm:$0xff]  }
 0x400   : > { %v6426_v34 = vpack.c.bf16 %v1664_v31, %v1664_v31  ;;  %v6428_v39 = vpack.c.bf16 %v1672_v8, %v1672_v8  ;;  %v5331_v25 = vld [vmem:[#allocation14 + $0x784] ss:$16 sps:$4 sm:$0xff]   ;;  %v5329_v30 = vld [vmem:[#allocation14 + $0x780] ss:$16 sps:$4 sm:$0xff]  }
 0x401   : > { %3279 = vmatprep.mubr.bf16.mxu0 %v6414_v24  ;;  %3320 = vmatprep.mubr.bf16.mxu1 %v6416_v35  ;;  %v5334_v31 = vld [vmem:[#allocation14 + $0x564] ss:$16 sps:$4 sm:$0xff]  }
 0x402   : > { %3280 = vmatmul.mubr.bf16.vlgmr.msra.gmra.mxu0 %v6418_v36  ;;  %3321 = vmatmul.mubr.bf16.vlgmr.msra.gmra.mxu1 %v6420_v37  ;;  %v5337_v8 = vld [vmem:[#allocation14 + $0x764] ss:$16 sps:$4 sm:$0xff]  }
 0x403   : > { %3330 = vmatpush1.bf16.msra.mxu0 %v5260_v27  ;;  %3371 = vmatpush1.bf16.msra.mxu1 %v5263_v33  ;;  %v5332_v27 = vld [vmem:[#allocation14 + $0x560] ss:$16 sps:$4 sm:$0xff]  }
 0x404   : > { %3361 = vmatprep.mubr.bf16.mxu0 %v6426_v34  ;;  %3402 = vmatprep.mubr.bf16.mxu1 %v6428_v39  ;;  %v5335_v33 = vld [vmem:[#allocation14 + $0x760] ss:$16 sps:$4 sm:$0xff]  }
 0x405   : > { %3331 = vmatprep.subr.bf16.mxu0 %v5268_v28  ;;  %3372 = vmatprep.subr.bf16.mxu1 %v5271_v4  ;;  %v5340_v28 = vld [vmem:[#allocation14 + $0x544] ss:$16 sps:$4 sm:$0xff]  }
 0x406   : > { %v5343_v4 = vld [vmem:[#allocation14 + $0x744] ss:$16 sps:$4 sm:$0xff]  }
 0x407   : > { %3332 = vmatpush1.bf16.msra.mxu0 %v5266_v38  ;;  %3373 = vmatpush1.bf16.msra.mxu1 %v5269_v40  ;;  %v5338_v38 = vld [vmem:[#allocation14 + $0x540] ss:$16 sps:$4 sm:$0xff]  }
 0x408   : > { %3333 = vmatprep.subr.bf16.mxu0 %v5274_v41  ;;  %3374 = vmatprep.subr.bf16.mxu1 %v5277_v43  ;;  %v5341_v40 = vld [vmem:[#allocation14 + $0x740] ss:$16 sps:$4 sm:$0xff]   ;;  %v5346_v41 = vld [vmem:[#allocation14 + $0x524] ss:$16 sps:$4 sm:$0xff]  }
 0x409   : > { %v5349_v43 = vld [vmem:[#allocation14 + $0x724] ss:$16 sps:$4 sm:$0xff]  }
 0x40b   : > { %3334 = vmatpush1.bf16.msra.mxu0 %v5272_v44  ;;  %3375 = vmatpush1.bf16.msra.mxu1 %v5275_v46  ;;  %v5344_v44 = vld [vmem:[#allocation14 + $0x520] ss:$16 sps:$4 sm:$0xff]  }
 0x40c   : > { %3335 = vmatprep.subr.bf16.mxu0 %v5280_v47  ;;  %3376 = vmatprep.subr.bf16.mxu1 %v5283_v42  ;;  %v5347_v46 = vld [vmem:[#allocation14 + $0x720] ss:$16 sps:$4 sm:$0xff]   ;;  %v5352_v47 = vld [vmem:[#allocation14 + $0x504] ss:$16 sps:$4 sm:$0xff]  }
 0x40d   : > { %v5355_v42 = vld [vmem:[#allocation14 + $0x704] ss:$16 sps:$4 sm:$0xff]  }
 0x40f   : > { %3336 = vmatpush1.bf16.msra.mxu0 %v5278_v48  ;;  %3377 = vmatpush1.bf16.msra.mxu1 %v5281_v49  ;;  %v5350_v48 = vld [vmem:[#allocation14 + $0x500] ss:$16 sps:$4 sm:$0xff]  }
 0x410   : > { %3337 = vmatprep.subr.bf16.mxu0 %v5286_v50  ;;  %3378 = vmatprep.subr.bf16.mxu1 %v5289_v51  ;;  %v5353_v49 = vld [vmem:[#allocation14 + $0x700] ss:$16 sps:$4 sm:$0xff]   ;;  %v1660_v50 = vrot.slane %v6398_v7, %v917_v1  ;;  %v1668_v51 = vrot.slane %v6398_v7, %v925_v26  ;;  %v5365_v1 = vld [vmem:[#allocation14 + $0x2c8] ss:$16 sps:$4 sm:$0xff]   ;;  %v5370_v26 = vld [vmem:[#allocation14 + $0xac] ss:$16 sps:$4 sm:$0xff]  }
 0x411   : > { %v5373_v7 = vld [vmem:[#allocation14 + $0x2ac] ss:$16 sps:$4 sm:$0xff]  }
 0x413   : > { %3338 = vmatpush1.bf16.msra.mxu0 %v5284_v45  ;;  %3379 = vmatpush1.bf16.msra.mxu1 %v5287_v54  ;;  %v5358_v45 = vld [vmem:[#allocation14 + $0xec] ss:$16 sps:$4 sm:$0xff]  }
 0x414   : > { %3339 = vmatprep.subr.bf16.mxu0 %v5292_v58  ;;  %3380 = vmatprep.subr.bf16.mxu1 %v5295_v59  ;;  %v5361_v54 = vld [vmem:[#allocation14 + $0x2ec] ss:$16 sps:$4 sm:$0xff]   ;;  %v5356_v58 = vld [vmem:[#allocation14 + $0xe8] ss:$16 sps:$4 sm:$0xff]   ;;  %v6438_v59 = vpack.c.bf16 %v1660_v50, %v1660_v50 }
 0x415   : > { %v5428_v50 = vld [vmem:[#allocation14 + $0x168] ss:$16 sps:$4 sm:$0xff]  }
 0x417   : > { %3340 = vmatpush1.bf16.msra.mxu0 %v5290_v61  ;;  %3381 = vmatpush1.bf16.msra.mxu1 %v5293_v62  ;;  %v6440_v61 = vpack.c.bf16 %v1668_v51, %v1668_v51  ;;  %v5359_v62 = vld [vmem:[#allocation14 + $0x2e8] ss:$16 sps:$4 sm:$0xff]  }
 0x418   : > { %3341 = vmatprep.subr.bf16.mxu0 %v5298_v63  ;;  %3382 = vmatprep.subr.bf16.mxu1 %v5301_v10  ;;  %v5364_v63 = vld [vmem:[#allocation14 + $0xcc] ss:$16 sps:$4 sm:$0xff]   ;;  %v5431_v51 = vld [vmem:[#allocation14 + $0x368] ss:$16 sps:$4 sm:$0xff]  }
 0x419   : > { %v5367_v10 = vld [vmem:[#allocation14 + $0x2cc] ss:$16 sps:$4 sm:$0xff]  }
 0x41b   : > { %3342 = vmatpush1.bf16.msra.mxu0 %v5296_v53  ;;  %3383 = vmatpush1.bf16.msra.mxu1 %v5299_v15  ;;  %v5368_v53 = vld [vmem:[#allocation14 + $0xa8] ss:$16 sps:$4 sm:$0xff]  }
 0x41c   : > { %3343 = vmatprep.subr.bf16.mxu0 %v5304_v57  ;;  %3384 = vmatprep.subr.bf16.mxu1 %v5307_v3  ;;  %v5371_v15 = vld [vmem:[#allocation14 + $0x2a8] ss:$16 sps:$4 sm:$0xff]   ;;  %v5376_v57 = vld [vmem:[#allocation14 + $0x8c] ss:$16 sps:$4 sm:$0xff]  }
 0x41d   : > { %v5379_v3 = vld [vmem:[#allocation14 + $0x28c] ss:$16 sps:$4 sm:$0xff]  }
 0x41f   : > { %3344 = vmatpush1.bf16.msra.mxu0 %v5302_v5  ;;  %3385 = vmatpush1.bf16.msra.mxu1 %v5305_v17  ;;  %v5374_v5 = vld [vmem:[#allocation14 + $0x88] ss:$16 sps:$4 sm:$0xff]   ;;  %v5382_v17 = vld [vmem:[#allocation14 + $0x6c] ss:$16 sps:$4 sm:$0xff]  }
 0x420   : > { %3345 = vmatprep.subr.bf16.mxu0 %v5310_v19  ;;  %3386 = vmatprep.subr.bf16.mxu1 %v5313_v52  ;;  %v5380_v19 = vld [vmem:[#allocation14 + $0x68] ss:$16 sps:$4 sm:$0xff]  }
 0x421   : > { %v5383_v52 = vld [vmem:[#allocation14 + $0x268] ss:$16 sps:$4 sm:$0xff]  }
 0x423   : > { %3346 = vmatpush2.bf16.msra.mxu0 %v5308_v13  ;;  %3387 = vmatpush2.bf16.msra.mxu1 %v5311_v55  ;;  %v5388_v13 = vld [vmem:[#allocation14 + $0x4c] ss:$16 sps:$4 sm:$0xff]  }
 0x424   : > { %3347 = vmatprep.subr.bf16.mxu0 %v5316_v9  ;;  %3388 = vmatprep.subr.bf16.mxu1 %v5319_v20  ;;  %v5391_v55 = vld [vmem:[#allocation14 + $0x24c] ss:$16 sps:$4 sm:$0xff]   ;;  %v5386_v9 = vld [vmem:[#allocation14 + $0x48] ss:$16 sps:$4 sm:$0xff]  }
 0x425   : > { %v5389_v20 = vld [vmem:[#allocation14 + $0x248] ss:$16 sps:$4 sm:$0xff]  }
 0x427   : > { %3348 = vmatpush2.bf16.msra.mxu0 %v5314_v21  ;;  %3389 = vmatpush2.bf16.msra.mxu1 %v5317_v18  ;;  %v5394_v21 = vld [vmem:[#allocation14 + $0x2c] ss:$16 sps:$4 sm:$0xff]  }
 0x428   : > { %3349 = vmatprep.subr.bf16.mxu0 %v5322_v6  ;;  %3390 = vmatprep.subr.bf16.mxu1 %v5325_v22  ;;  %v5397_v18 = vld [vmem:[#allocation14 + $0x22c] ss:$16 sps:$4 sm:$0xff]   ;;  %v5392_v6 = vld [vmem:[#allocation14 + $0x28] ss:$16 sps:$4 sm:$0xff]  }
 0x429   : > { %v5395_v22 = vld [vmem:[#allocation14 + $0x228] ss:$16 sps:$4 sm:$0xff]  }
 0x42b   : > { %3350 = vmatpush2.bf16.msra.mxu0 %v5320_v23  ;;  %3391 = vmatpush2.bf16.msra.mxu1 %v5323_v32  ;;  %v5400_v23 = vld [vmem:[#allocation14 + $0xc] ss:$16 sps:$4 sm:$0xff]  }
 0x42c   : > { %3351 = vmatprep.subr.bf16.mxu0 %v5328_v11  ;;  %3392 = vmatprep.subr.bf16.mxu1 %v5331_v25  ;;  %v5403_v32 = vld [vmem:[#allocation14 + $0x20c] ss:$16 sps:$4 sm:$0xff]   ;;  %v5398_v11 = vld [vmem:[#allocation14 + $0x8] ss:$16 sps:$4 sm:$0xff]  }
 0x42d   : > { %v5401_v25 = vld [vmem:[#allocation14 + $0x208] ss:$16 sps:$4 sm:$0xff]  }
 0x42f   : > { %3352 = vmatpush2.bf16.msra.mxu0 %v5326_v29  ;;  %3393 = vmatpush2.bf16.msra.mxu1 %v5329_v30  ;;  %v5406_v29 = vld [vmem:[#allocation14 + $0x1ec] ss:$16 sps:$4 sm:$0xff]  }
 0x430   : > { %3353 = vmatprep.subr.bf16.mxu0 %v5334_v31  ;;  %3394 = vmatprep.subr.bf16.mxu1 %v5337_v8  ;;  %v5409_v30 = vld [vmem:[#allocation14 + $0x3ec] ss:$16 sps:$4 sm:$0xff]   ;;  %v5404_v31 = vld [vmem:[#allocation14 + $0x1e8] ss:$16 sps:$4 sm:$0xff]  }
 0x431   : > { %v5407_v8 = vld [vmem:[#allocation14 + $0x3e8] ss:$16 sps:$4 sm:$0xff]  }
 0x433   : > { %3354 = vmatpush2.bf16.msra.mxu0 %v5332_v27  ;;  %3395 = vmatpush2.bf16.msra.mxu1 %v5335_v33  ;;  %v5412_v27 = vld [vmem:[#allocation14 + $0x1cc] ss:$16 sps:$4 sm:$0xff]  }
 0x434   : > { %3355 = vmatprep.subr.bf16.mxu0 %v5340_v28  ;;  %3396 = vmatprep.subr.bf16.mxu1 %v5343_v4  ;;  %v5415_v33 = vld [vmem:[#allocation14 + $0x3cc] ss:$16 sps:$4 sm:$0xff]   ;;  %v5410_v28 = vld [vmem:[#allocation14 + $0x1c8] ss:$16 sps:$4 sm:$0xff]  }
 0x435   : > { %v5413_v4 = vld [vmem:[#allocation14 + $0x3c8] ss:$16 sps:$4 sm:$0xff]  }
 0x437   : > { %3356 = vmatpush2.bf16.msra.mxu0 %v5338_v38  ;;  %3397 = vmatpush2.bf16.msra.mxu1 %v5341_v40  ;;  %v5418_v38 = vld [vmem:[#allocation14 + $0x1ac] ss:$16 sps:$4 sm:$0xff]  }
 0x438   : > { %3357 = vmatprep.subr.bf16.mxu0 %v5346_v41  ;;  %3398 = vmatprep.subr.bf16.mxu1 %v5349_v43  ;;  %v5421_v40 = vld [vmem:[#allocation14 + $0x3ac] ss:$16 sps:$4 sm:$0xff]   ;;  %v5416_v41 = vld [vmem:[#allocation14 + $0x1a8] ss:$16 sps:$4 sm:$0xff]  }
 0x439   : > { %v5419_v43 = vld [vmem:[#allocation14 + $0x3a8] ss:$16 sps:$4 sm:$0xff]  }
 0x43b   : > { %3358 = vmatpush2.bf16.msra.mxu0 %v5344_v44  ;;  %3399 = vmatpush2.bf16.msra.mxu1 %v5347_v46  ;;  %v5424_v44 = vld [vmem:[#allocation14 + $0x18c] ss:$16 sps:$4 sm:$0xff]  }
 0x43c   : > { %3359 = vmatprep.subr.bf16.mxu0 %v5352_v47  ;;  %3400 = vmatprep.subr.bf16.mxu1 %v5355_v42  ;;  %v5427_v46 = vld [vmem:[#allocation14 + $0x38c] ss:$16 sps:$4 sm:$0xff]   ;;  %v5422_v47 = vld [vmem:[#allocation14 + $0x188] ss:$16 sps:$4 sm:$0xff]  }
 0x43d   : > { %v5425_v42 = vld [vmem:[#allocation14 + $0x388] ss:$16 sps:$4 sm:$0xff]  }
 0x43f   : > { %3360 = vmatpush2.bf16.msra.mxu0 %v5350_v48  ;;  %3401 = vmatpush2.bf16.msra.mxu1 %v5353_v49  ;;  %v5430_v48 = vld [vmem:[#allocation14 + $0x16c] ss:$16 sps:$4 sm:$0xff]  }
 0x440   : > { %3411 = vmatprep.subr.bf16.mxu0 %v5358_v45  ;;  %3452 = vmatprep.subr.bf16.mxu1 %v5361_v54  ;;  %v5433_v49 = vld [vmem:[#allocation14 + $0x36c] ss:$16 sps:$4 sm:$0xff]  }
 0x441   : > { %v5436_v45 = vld [vmem:[#allocation14 + $0x14c] ss:$16 sps:$4 sm:$0xff]  }
 0x442   : > { %3362 = vmatmul.mubr.bf16.vlgmr.msra.gmra.mxu0 %v6438_v59  ;;  %3403 = vmatmul.mubr.bf16.vlgmr.msra.gmra.mxu1 %v6440_v61  ;;  %v5439_v54 = vld [vmem:[#allocation14 + $0x34c] ss:$16 sps:$4 sm:$0xff]  }
 0x443   : > { %3412 = vmatpush1.bf16.msra.mxu0 %v5356_v58  ;;  %3443 = vmatprep.mubr.bf16.mxu0 %v6414_v24  ;;  %v5377_v24 = vld [vmem:[#allocation14 + $0x288] ss:$16 sps:$4 sm:$0xff]  }
 0x444   : > { %3453 = vmatpush1.bf16.msra.mxu1 %v5359_v62  ;;  %3484 = vmatprep.mubr.bf16.mxu1 %v6416_v35  ;;  %v5385_v35 = vld [vmem:[#allocation14 + $0x26c] ss:$16 sps:$4 sm:$0xff]   ;;  %v5434_v58 = vld [vmem:[#allocation14 + $0x148] ss:$16 sps:$4 sm:$0xff]  }
 0x445   : > { %3413 = vmatprep.subr.bf16.mxu0 %v5364_v63  ;;  %3454 = vmatprep.subr.bf16.mxu1 %v5367_v10  ;;  %v5437_v62 = vld [vmem:[#allocation14 + $0x348] ss:$16 sps:$4 sm:$0xff]   ;;  %v5442_v63 = vld [vmem:[#allocation14 + $0x12c] ss:$16 sps:$4 sm:$0xff]  }
 0x446   : > { %v5445_v10 = vld [vmem:[#allocation14 + $0x32c] ss:$16 sps:$4 sm:$0xff]  }
 0x447   : > { %3414 = vmatpush1.bf16.msra.mxu0 %v5362_v60  ;;  %v5440_v60 = vld [vmem:[#allocation14 + $0x128] ss:$16 sps:$4 sm:$0xff]  }
 0x448   : > { %3455 = vmatpush1.bf16.msra.mxu1 %v5365_v1  ;;  %3415 = vmatprep.subr.bf16.mxu0 %v5370_v26  ;;  %v5443_v1 = vld [vmem:[#allocation14 + $0x328] ss:$16 sps:$4 sm:$0xff]   ;;  %v5448_v26 = vld [vmem:[#allocation14 + $0x10c] ss:$16 sps:$4 sm:$0xff]  }
 0x449   : > { %3456 = vmatprep.subr.bf16.mxu1 %v5373_v7  ;;  %v5451_v7 = vld [vmem:[#allocation14 + $0x30c] ss:$16 sps:$4 sm:$0xff]  }
 0x44b   : > { %3416 = vmatpush1.bf16.msra.mxu0 %v5368_v53  ;;  %v5446_v53 = vld [vmem:[#allocation14 + $0x108] ss:$16 sps:$4 sm:$0xff]  }
 0x44c   : > { %3457 = vmatpush1.bf16.msra.mxu1 %v5371_v15  ;;  %3417 = vmatprep.subr.bf16.mxu0 %v5376_v57  ;;  %v5449_v15 = vld [vmem:[#allocation14 + $0x308] ss:$16 sps:$4 sm:$0xff]   ;;  %v5454_v57 = vld [vmem:[#allocation14 + $0x4ec] ss:$16 sps:$4 sm:$0xff]  }
 0x44d   : > { %3458 = vmatprep.subr.bf16.mxu1 %v5379_v3  ;;  %v5457_v3 = vld [vmem:[#allocation14 + $0x6ec] ss:$16 sps:$4 sm:$0xff]  }
 0x44f   : > { %3418 = vmatpush1.bf16.msra.mxu0 %v5374_v5  ;;  %v5452_v5 = vld [vmem:[#allocation14 + $0x4e8] ss:$16 sps:$4 sm:$0xff]  }
 0x450   : > { %3459 = vmatpush1.bf16.msra.mxu1 %v5377_v24  ;;  %3419 = vmatprep.subr.bf16.mxu0 %v5382_v17  ;;  %v5455_v24 = vld [vmem:[#allocation14 + $0x6e8] ss:$16 sps:$4 sm:$0xff]   ;;  %v5460_v17 = vld [vmem:[#allocation14 + $0x4cc] ss:$16 sps:$4 sm:$0xff]  }
 0x451   : > { %3460 = vmatprep.subr.bf16.mxu1 %v5385_v35  ;;  %v5463_v35 = vld [vmem:[#allocation14 + $0x6cc] ss:$16 sps:$4 sm:$0xff]  }
 0x453   : > { %3420 = vmatpush1.bf16.msra.mxu0 %v5380_v19  ;;  %v5458_v19 = vld [vmem:[#allocation14 + $0x4c8] ss:$16 sps:$4 sm:$0xff]  }
 0x454   : > { %3461 = vmatpush1.bf16.msra.mxu1 %v5383_v52  ;;  %3421 = vmatprep.subr.bf16.mxu0 %v5388_v13  ;;  %v5461_v52 = vld [vmem:[#allocation14 + $0x6c8] ss:$16 sps:$4 sm:$0xff]   ;;  %v5466_v13 = vld [vmem:[#allocation14 + $0x4ac] ss:$16 sps:$4 sm:$0xff]  }
 0x455   : > { %3462 = vmatprep.subr.bf16.mxu1 %v5391_v55  ;;  %v5469_v55 = vld [vmem:[#allocation14 + $0x6ac] ss:$16 sps:$4 sm:$0xff]  }
 0x457   : > { %3422 = vmatpush1.bf16.msra.mxu0 %v5386_v9  ;;  %v5464_v9 = vld [vmem:[#allocation14 + $0x4a8] ss:$16 sps:$4 sm:$0xff]  }
 0x458   : > { %3463 = vmatpush1.bf16.msra.mxu1 %v5389_v20  ;;  %3423 = vmatprep.subr.bf16.mxu0 %v5394_v21  ;;  %v5472_v20 = vld [vmem:[#allocation14 + $0x48c] ss:$16 sps:$4 sm:$0xff]   ;;  %v5470_v21 = vld [vmem:[#allocation14 + $0x488] ss:$16 sps:$4 sm:$0xff]  }
 0x459   : > { %3464 = vmatprep.subr.bf16.mxu1 %v5397_v18  ;;  %v5478_v18 = vld [vmem:[#allocation14 + $0x46c] ss:$16 sps:$4 sm:$0xff]  }
 0x45b   : > { %3424 = vmatpush1.bf16.msra.mxu0 %v5392_v6  ;;  %v5481_v6 = vld [vmem:[#allocation14 + $0x66c] ss:$16 sps:$4 sm:$0xff]  }
 0x45c   : > { %3465 = vmatpush1.bf16.msra.mxu1 %v5395_v22  ;;  %3425 = vmatprep.subr.bf16.mxu0 %v5400_v23  ;;  %v5479_v22 = vld [vmem:[#allocation14 + $0x668] ss:$16 sps:$4 sm:$0xff]   ;;  %v5484_v23 = vld [vmem:[#allocation14 + $0x44c] ss:$16 sps:$4 sm:$0xff]  }
 0x45d   : > { %3466 = vmatprep.subr.bf16.mxu1 %v5403_v32  ;;  %v5487_v32 = vld [vmem:[#allocation14 + $0x64c] ss:$16 sps:$4 sm:$0xff]  }
 0x45f   : > { %3426 = vmatpush1.bf16.msra.mxu0 %v5398_v11  ;;  %v5482_v11 = vld [vmem:[#allocation14 + $0x448] ss:$16 sps:$4 sm:$0xff]  }
 0x460   : > { %3467 = vmatpush1.bf16.msra.mxu1 %v5401_v25  ;;  %3427 = vmatprep.subr.bf16.mxu0 %v5406_v29  ;;  %v5485_v25 = vld [vmem:[#allocation14 + $0x648] ss:$16 sps:$4 sm:$0xff]   ;;  %v5490_v29 = vld [vmem:[#allocation14 + $0x42c] ss:$16 sps:$4 sm:$0xff]  }
 0x461   : > { %3468 = vmatprep.subr.bf16.mxu1 %v5409_v30  ;;  %v5493_v30 = vld [vmem:[#allocation14 + $0x62c] ss:$16 sps:$4 sm:$0xff]  }
 0x463   : > { %3428 = vmatpush2.bf16.msra.mxu0 %v5404_v31  ;;  %v5488_v31 = vld [vmem:[#allocation14 + $0x428] ss:$16 sps:$4 sm:$0xff]  }
 0x464   : > { %3469 = vmatpush2.bf16.msra.mxu1 %v5407_v8  ;;  %3429 = vmatprep.subr.bf16.mxu0 %v5412_v27  ;;  %v5491_v8 = vld [vmem:[#allocation14 + $0x628] ss:$16 sps:$4 sm:$0xff]   ;;  %v5496_v27 = vld [vmem:[#allocation14 + $0x40c] ss:$16 sps:$4 sm:$0xff]  }
 0x465   : > { %3470 = vmatprep.subr.bf16.mxu1 %v5415_v33  ;;  %v5499_v33 = vld [vmem:[#allocation14 + $0x60c] ss:$16 sps:$4 sm:$0xff]  }
 0x467   : > { %3430 = vmatpush2.bf16.msra.mxu0 %v5410_v28  ;;  %v5494_v28 = vld [vmem:[#allocation14 + $0x408] ss:$16 sps:$4 sm:$0xff]  }
 0x468   : > { %3471 = vmatpush2.bf16.msra.mxu1 %v5413_v4  ;;  %3431 = vmatprep.subr.bf16.mxu0 %v5418_v38  ;;  %v5497_v4 = vld [vmem:[#allocation14 + $0x608] ss:$16 sps:$4 sm:$0xff]   ;;  %v5502_v38 = vld [vmem:[#allocation14 + $0x5ec] ss:$16 sps:$4 sm:$0xff]  }
 0x469   : > { %3472 = vmatprep.subr.bf16.mxu1 %v5421_v40  ;;  %v5505_v40 = vld [vmem:[#allocation14 + $0x7ec] ss:$16 sps:$4 sm:$0xff]  }
 0x46b   : > { %3432 = vmatpush2.bf16.msra.mxu0 %v5416_v41  ;;  %v5500_v41 = vld [vmem:[#allocation14 + $0x5e8] ss:$16 sps:$4 sm:$0xff]  }
 0x46c   : > { %3473 = vmatpush2.bf16.msra.mxu1 %v5419_v43  ;;  %3433 = vmatprep.subr.bf16.mxu0 %v5424_v44  ;;  %v5503_v43 = vld [vmem:[#allocation14 + $0x7e8] ss:$16 sps:$4 sm:$0xff]   ;;  %v5508_v44 = vld [vmem:[#allocation14 + $0x5cc] ss:$16 sps:$4 sm:$0xff]  }
 0x46d   : > { %3474 = vmatprep.subr.bf16.mxu1 %v5427_v46  ;;  %v5511_v46 = vld [vmem:[#allocation14 + $0x7cc] ss:$16 sps:$4 sm:$0xff]  }
 0x46f   : > { %3434 = vmatpush2.bf16.msra.mxu0 %v5422_v47  ;;  %v5506_v47 = vld [vmem:[#allocation14 + $0x5c8] ss:$16 sps:$4 sm:$0xff]  }
 0x470   : > { %3475 = vmatpush2.bf16.msra.mxu1 %v5425_v42  ;;  %3435 = vmatprep.subr.bf16.mxu0 %v5430_v48  ;;  %v5509_v42 = vld [vmem:[#allocation14 + $0x7c8] ss:$16 sps:$4 sm:$0xff]   ;;  %v5514_v48 = vld [vmem:[#allocation14 + $0x5ac] ss:$16 sps:$4 sm:$0xff]  }
 0x471   : > { %3476 = vmatprep.subr.bf16.mxu1 %v5433_v49  ;;  %v5517_v49 = vld [vmem:[#allocation14 + $0x7ac] ss:$16 sps:$4 sm:$0xff]  }
 0x473   : > { %3436 = vmatpush2.bf16.msra.mxu0 %v5428_v50  ;;  %v5512_v50 = vld [vmem:[#allocation14 + $0x5a8] ss:$16 sps:$4 sm:$0xff]  }
 0x474   : > { %3477 = vmatpush2.bf16.msra.mxu1 %v5431_v51  ;;  %3437 = vmatprep.subr.bf16.mxu0 %v5436_v45  ;;  %v5515_v51 = vld [vmem:[#allocation14 + $0x7a8] ss:$16 sps:$4 sm:$0xff]   ;;  %v5520_v45 = vld [vmem:[#allocation14 + $0x58c] ss:$16 sps:$4 sm:$0xff]  }
 0x475   : > { %3478 = vmatprep.subr.bf16.mxu1 %v5439_v54  ;;  %v5523_v54 = vld [vmem:[#allocation14 + $0x78c] ss:$16 sps:$4 sm:$0xff]  }
 0x477   : > { %3438 = vmatpush2.bf16.msra.mxu0 %v5434_v58  ;;  %v5518_v58 = vld [vmem:[#allocation14 + $0x588] ss:$16 sps:$4 sm:$0xff]  }
 0x478   : > { %3479 = vmatpush2.bf16.msra.mxu1 %v5437_v62  ;;  %3439 = vmatprep.subr.bf16.mxu0 %v5442_v63  ;;  %v5521_v62 = vld [vmem:[#allocation14 + $0x788] ss:$16 sps:$4 sm:$0xff]   ;;  %v5526_v63 = vld [vmem:[#allocation14 + $0x56c] ss:$16 sps:$4 sm:$0xff]  }
 0x479   : > { %3480 = vmatprep.subr.bf16.mxu1 %v5445_v10  ;;  %v5529_v10 = vld [vmem:[#allocation14 + $0x76c] ss:$16 sps:$4 sm:$0xff]  }
 0x47b   : > { %3440 = vmatpush2.bf16.msra.mxu0 %v5440_v60  ;;  %v5524_v60 = vld [vmem:[#allocation14 + $0x568] ss:$16 sps:$4 sm:$0xff]  }
 0x47c   : > { %3481 = vmatpush2.bf16.msra.mxu1 %v5443_v1  ;;  %3441 = vmatprep.subr.bf16.mxu0 %v5448_v26  ;;  %v5527_v1 = vld [vmem:[#allocation14 + $0x768] ss:$16 sps:$4 sm:$0xff]   ;;  %v5532_v26 = vld [vmem:[#allocation14 + $0x54c] ss:$16 sps:$4 sm:$0xff]  }
 0x47d   : > { %3482 = vmatprep.subr.bf16.mxu1 %v5451_v7  ;;  %v5535_v7 = vld [vmem:[#allocation14 + $0x74c] ss:$16 sps:$4 sm:$0xff]  }
 0x47f   : > { %3442 = vmatpush2.bf16.msra.mxu0 %v5446_v53  ;;  %v5530_v53 = vld [vmem:[#allocation14 + $0x548] ss:$16 sps:$4 sm:$0xff]  }
 0x480   : > { %3483 = vmatpush2.bf16.msra.mxu1 %v5449_v15  ;;  %3493 = vmatprep.subr.bf16.mxu0 %v5454_v57  ;;  %v5533_v15 = vld [vmem:[#allocation14 + $0x748] ss:$16 sps:$4 sm:$0xff]   ;;  %v5538_v57 = vld [vmem:[#allocation14 + $0x52c] ss:$16 sps:$4 sm:$0xff]  }
 0x481   : > { %3534 = vmatprep.subr.bf16.mxu1 %v5457_v3  ;;  %v5541_v3 = vld [vmem:[#allocation14 + $0x72c] ss:$16 sps:$4 sm:$0xff]  }
 0x482   : > { %3444 = vmatmul.mubr.bf16.vlgmr.msra.gmra.mxu0 %v6418_v36  ;;  %v5467_v36 = vld [vmem:[#allocation14 + $0x6a8] ss:$16 sps:$4 sm:$0xff]  }
 0x483   : > { %3485 = vmatmul.mubr.bf16.vlgmr.msra.gmra.mxu1 %v6420_v37  ;;  %3494 = vmatpush1.bf16.msra.mxu0 %v5452_v5  ;;  %v5475_v37 = vld [vmem:[#allocation14 + $0x68c] ss:$16 sps:$4 sm:$0xff]   ;;  %v5536_v5 = vld [vmem:[#allocation14 + $0x528] ss:$16 sps:$4 sm:$0xff]  }
 0x484   : > { %3525 = vmatprep.mubr.bf16.mxu0 %v6426_v34  ;;  %3535 = vmatpush1.bf16.msra.mxu1 %v5455_v24  ;;  %v5473_v34 = vld [vmem:[#allocation14 + $0x688] ss:$16 sps:$4 sm:$0xff]  }
 0x485   : > { %3566 = vmatprep.mubr.bf16.mxu1 %v6428_v39  ;;  %3495 = vmatprep.subr.bf16.mxu0 %v5460_v17  ;;  %v5476_v39 = vld [vmem:[#allocation14 + $0x468] ss:$16 sps:$4 sm:$0xff]   ;;  %v5544_v17 = vld [vmem:[#allocation14 + $0x50c] ss:$16 sps:$4 sm:$0xff]  }
 0x486   : > { %3536 = vmatprep.subr.bf16.mxu1 %v5463_v35  ;;  %v5539_v24 = vld [vmem:[#allocation14 + $0x728] ss:$16 sps:$4 sm:$0xff]   ;;  %v5547_v35 = vld [vmem:[#allocation14 + $0x70c] ss:$16 sps:$4 sm:$0xff]  }
 0x487   : > { %3496 = vmatpush1.bf16.msra.mxu0 %v5458_v19  ;;  %v5542_v19 = vld [vmem:[#allocation14 + $0x508] ss:$16 sps:$4 sm:$0xff]  }
 0x488   : > { %3537 = vmatpush1.bf16.msra.mxu1 %v5461_v52  ;;  %3497 = vmatprep.subr.bf16.mxu0 %v5466_v13  ;;  %v5545_v52 = vld [vmem:[#allocation14 + $0x708] ss:$16 sps:$4 sm:$0xff]   ;;  %v5550_v13 = vld [vmem:[#allocation15 + $0x74] ss:$8 sps:$4 sm:$0xff]  }
 0x489   : > { %3538 = vmatprep.subr.bf16.mxu1 %v5469_v55  ;;  %v5548_v55 = vld [vmem:[#allocation15 + $0x70] ss:$8 sps:$4 sm:$0xff]  }
 0x48b   : > { %3498 = vmatpush1.bf16.msra.mxu0 %v5464_v9  ;;  %v5553_v9 = vld [vmem:[#allocation15 + $0x64] ss:$8 sps:$4 sm:$0xff]  }
 0x48c   : > { %3539 = vmatpush1.bf16.msra.mxu1 %v5467_v36  ;;  %3499 = vmatprep.subr.bf16.mxu0 %v5472_v20 }
 0x48d   : > { %3540 = vmatprep.subr.bf16.mxu1 %v5475_v37  ;;  %v5551_v37 = vld [vmem:[#allocation15 + $0x60] ss:$8 sps:$4 sm:$0xff]  }
 0x48f   : > { %3500 = vmatpush1.bf16.msra.mxu0 %v5470_v21 }
 0x490   : > { %3541 = vmatpush1.bf16.msra.mxu1 %v5473_v34  ;;  %3501 = vmatprep.subr.bf16.mxu0 %v5478_v18  ;;  %v5556_v18 = vld [vmem:[#allocation15 + $0x54] ss:$8 sps:$4 sm:$0xff]  }
 0x491   : > { %3542 = vmatprep.subr.bf16.mxu1 %v5481_v6 }
 0x493   : > { %3502 = vmatpush1.bf16.msra.mxu0 %v5476_v39 }
 0x494   : > { %3543 = vmatpush1.bf16.msra.mxu1 %v5479_v22  ;;  %3503 = vmatprep.subr.bf16.mxu0 %v5484_v23  ;;  %v5554_v22 = vld [vmem:[#allocation15 + $0x50] ss:$8 sps:$4 sm:$0xff]  }
 0x495   : > { %3544 = vmatprep.subr.bf16.mxu1 %v5487_v32  ;;  %v5559_v32 = vld [vmem:[#allocation15 + $0x44] ss:$8 sps:$4 sm:$0xff]  }
 0x497   : > { %3504 = vmatpush1.bf16.msra.mxu0 %v5482_v11  ;;  %v5596_v11 = vld [vmem:[#allocation15 + $0x170] ss:$8 sps:$4 sm:$0xff]  }
 0x498   : > { %3545 = vmatpush1.bf16.msra.mxu1 %v5485_v25  ;;  %3505 = vmatprep.subr.bf16.mxu0 %v5490_v29  ;;  %v5598_v25 = vld [vmem:[#allocation15 + $0x174] ss:$8 sps:$4 sm:$0xff]   ;;  %v5601_v29 = vld [vmem:[#allocation15 + $0x164] ss:$8 sps:$4 sm:$0xff]  }
 0x499   : > { %3546 = vmatprep.subr.bf16.mxu1 %v5493_v30  ;;  %v5562_v30 = vld [vmem:[#allocation15 + $0x34] ss:$8 sps:$4 sm:$0xff]  }
 0x49b   : > { %3506 = vmatpush1.bf16.msra.mxu0 %v5488_v31  ;;  %v5599_v31 = vld [vmem:[#allocation15 + $0x160] ss:$8 sps:$4 sm:$0xff]  }
 0x49c   : > { %3547 = vmatpush1.bf16.msra.mxu1 %v5491_v8  ;;  %3507 = vmatprep.subr.bf16.mxu0 %v5496_v27  ;;  %v5604_v8 = vld [vmem:[#allocation15 + $0x154] ss:$8 sps:$4 sm:$0xff]   ;;  %v5560_v27 = vld [vmem:[#allocation15 + $0x30] ss:$8 sps:$4 sm:$0xff]  }
 0x49d   : > { %3548 = vmatprep.subr.bf16.mxu1 %v5499_v33  ;;  %v5565_v33 = vld [vmem:[#allocation15 + $0x24] ss:$8 sps:$4 sm:$0xff]  }
 0x49f   : > { %3508 = vmatpush1.bf16.msra.mxu0 %v5494_v28  ;;  %v5602_v28 = vld [vmem:[#allocation15 + $0x150] ss:$8 sps:$4 sm:$0xff]  }
 0x4a0   : > { %3549 = vmatpush1.bf16.msra.mxu1 %v5497_v4  ;;  %3509 = vmatprep.subr.bf16.mxu0 %v5502_v38  ;;  %v5607_v4 = vld [vmem:[#allocation15 + $0x144] ss:$8 sps:$4 sm:$0xff]   ;;  %v5563_v38 = vld [vmem:[#allocation15 + $0x20] ss:$8 sps:$4 sm:$0xff]  }
 0x4a1   : > { %3550 = vmatprep.subr.bf16.mxu1 %v5505_v40  ;;  %v5568_v40 = vld [vmem:[#allocation15 + $0x14] ss:$8 sps:$4 sm:$0xff]  }
 0x4a3   : > { %3510 = vmatpush2.bf16.msra.mxu0 %v5500_v41  ;;  %v5605_v41 = vld [vmem:[#allocation15 + $0x140] ss:$8 sps:$4 sm:$0xff]  }
 0x4a4   : > { %3551 = vmatpush2.bf16.msra.mxu1 %v5503_v43  ;;  %3511 = vmatprep.subr.bf16.mxu0 %v5508_v44  ;;  %v5610_v43 = vld [vmem:[#allocation15 + $0x134] ss:$8 sps:$4 sm:$0xff]   ;;  %v5566_v44 = vld [vmem:[#allocation15 + $0x10] ss:$8 sps:$4 sm:$0xff]  }
 0x4a5   : > { %3552 = vmatprep.subr.bf16.mxu1 %v5511_v46  ;;  %v5571_v46 = vld [vmem:[#allocation15 + $0x4] ss:$8 sps:$4 sm:$0xff]  }
 0x4a7   : > { %3512 = vmatpush2.bf16.msra.mxu0 %v5506_v47  ;;  %v5608_v47 = vld [vmem:[#allocation15 + $0x130] ss:$8 sps:$4 sm:$0xff]  }
 0x4a8   : > { %3553 = vmatpush2.bf16.msra.mxu1 %v5509_v42  ;;  %3513 = vmatprep.subr.bf16.mxu0 %v5514_v48  ;;  %v5613_v42 = vld [vmem:[#allocation15 + $0x124] ss:$8 sps:$4 sm:$0xff]   ;;  %v5569_v48 = vld [vmem:[#allocation15] ss:$8 sps:$4 sm:$0xff]  }
 0x4a9   : > { %3554 = vmatprep.subr.bf16.mxu1 %v5517_v49  ;;  %v5574_v49 = vld [vmem:[#allocation15 + $0xf4] ss:$8 sps:$4 sm:$0xff]  }
 0x4ab   : > { %3514 = vmatpush2.bf16.msra.mxu0 %v5512_v50  ;;  %v5611_v50 = vld [vmem:[#allocation15 + $0x120] ss:$8 sps:$4 sm:$0xff]  }
 0x4ac   : > { %3555 = vmatpush2.bf16.msra.mxu1 %v5515_v51  ;;  %3515 = vmatprep.subr.bf16.mxu0 %v5520_v45  ;;  %v5616_v51 = vld [vmem:[#allocation15 + $0x114] ss:$8 sps:$4 sm:$0xff]   ;;  %v5572_v45 = vld [vmem:[#allocation15 + $0xf0] ss:$8 sps:$4 sm:$0xff]  }
 0x4ad   : > { %3556 = vmatprep.subr.bf16.mxu1 %v5523_v54  ;;  %v5577_v54 = vld [vmem:[#allocation15 + $0xe4] ss:$8 sps:$4 sm:$0xff]  }
 0x4af   : > { %3516 = vmatpush2.bf16.msra.mxu0 %v5518_v58  ;;  %v5614_v58 = vld [vmem:[#allocation15 + $0x110] ss:$8 sps:$4 sm:$0xff]  }
 0x4b0   : > { %3557 = vmatpush2.bf16.msra.mxu1 %v5521_v62  ;;  %3517 = vmatprep.subr.bf16.mxu0 %v5526_v63  ;;  %v5619_v62 = vld [vmem:[#allocation15 + $0x104] ss:$8 sps:$4 sm:$0xff]   ;;  %v5575_v63 = vld [vmem:[#allocation15 + $0xe0] ss:$8 sps:$4 sm:$0xff]  }
 0x4b1   : > { %3558 = vmatprep.subr.bf16.mxu1 %v5529_v10  ;;  %v5580_v10 = vld [vmem:[#allocation15 + $0xd4] ss:$8 sps:$4 sm:$0xff]  }
 0x4b3   : > { %3518 = vmatpush2.bf16.msra.mxu0 %v5524_v60  ;;  %v5617_v60 = vld [vmem:[#allocation15 + $0x100] ss:$8 sps:$4 sm:$0xff]  }
 0x4b4   : > { %3559 = vmatpush2.bf16.msra.mxu1 %v5527_v1  ;;  %3519 = vmatprep.subr.bf16.mxu0 %v5532_v26  ;;  %v5622_v1 = vld [vmem:[#allocation15 + $0x1f4] ss:$8 sps:$4 sm:$0xff]   ;;  %v5578_v26 = vld [vmem:[#allocation15 + $0xd0] ss:$8 sps:$4 sm:$0xff]  }
 0x4b5   : > { %3560 = vmatprep.subr.bf16.mxu1 %v5535_v7  ;;  %v5583_v7 = vld [vmem:[#allocation15 + $0xc4] ss:$8 sps:$4 sm:$0xff]  }
 0x4b7   : > { %3520 = vmatpush2.bf16.msra.mxu0 %v5530_v53  ;;  %v5620_v53 = vld [vmem:[#allocation15 + $0x1f0] ss:$8 sps:$4 sm:$0xff]  }
 0x4b8   : > { %3561 = vmatpush2.bf16.msra.mxu1 %v5533_v15  ;;  %3521 = vmatprep.subr.bf16.mxu0 %v5538_v57  ;;  %v5625_v15 = vld [vmem:[#allocation15 + $0x1e4] ss:$8 sps:$4 sm:$0xff]   ;;  %v5581_v57 = vld [vmem:[#allocation15 + $0xc0] ss:$8 sps:$4 sm:$0xff]  }
 0x4b9   : > { %3562 = vmatprep.subr.bf16.mxu1 %v5541_v3  ;;  %v5586_v3 = vld [vmem:[#allocation15 + $0xb4] ss:$8 sps:$4 sm:$0xff]  }
 0x4bb   : > { %3522 = vmatpush2.bf16.msra.mxu0 %v5536_v5  ;;  %v5623_v5 = vld [vmem:[#allocation15 + $0x1e0] ss:$8 sps:$4 sm:$0xff]  }
 0x4bc   : > { %3563 = vmatpush2.bf16.msra.mxu1 %v5539_v24  ;;  %3523 = vmatprep.subr.bf16.mxu0 %v5544_v17  ;;  %v5628_v24 = vld [vmem:[#allocation15 + $0x1d4] ss:$8 sps:$4 sm:$0xff]   ;;  %v5584_v17 = vld [vmem:[#allocation15 + $0xb0] ss:$8 sps:$4 sm:$0xff]  }
 0x4bd   : > { %3564 = vmatprep.subr.bf16.mxu1 %v5547_v35  ;;  %v5589_v35 = vld [vmem:[#allocation15 + $0xa4] ss:$8 sps:$4 sm:$0xff]  }
 0x4bf   : > { %3524 = vmatpush2.bf16.msra.mxu0 %v5542_v19  ;;  %v5626_v19 = vld [vmem:[#allocation15 + $0x1d0] ss:$8 sps:$4 sm:$0xff]  }
 0x4c0   : > { %3565 = vmatpush2.bf16.msra.mxu1 %v5545_v52  ;;  %3979 = vmatprep.subr.bf16.mxu0 %v5550_v13  ;;  %v5631_v52 = vld [vmem:[#allocation15 + $0x1c4] ss:$8 sps:$4 sm:$0xff]   ;;  %v5587_v13 = vld [vmem:[#allocation15 + $0xa0] ss:$8 sps:$4 sm:$0xff]  }
 0x4c1   : > { %4020 = vmatprep.subr.bf16.mxu1 %v5598_v25 }
 0x4c2   : > { %3526 = vmatmul.mubr.bf16.vlgmr.msra.gmra.mxu0 %v6438_v59  ;;  %v6451_v36 = vpop.f32.mrf.mxu0  ;;  %v6453_v20 = vpop.f32.mrf.mxu1 }
 0x4c3   : > { %3567 = vmatmul.mubr.bf16.vlgmr.msra.gmra.mxu1 %v6440_v61  ;;  %3980 = vmatpush1.bf16.msra.mxu0 %v5548_v55  ;;  %v5557_v61 = vld [vmem:[#allocation15 + $0x40] ss:$8 sps:$4 sm:$0xff]   ;;  %v5592_v55 = vld [vmem:[#allocation15 + $0x94] ss:$8 sps:$4 sm:$0xff]  }
 0x4c4   : > { %v6456_v21 = vpop.f32.mrf.mxu0  ;;  %v6458_v34 = vpop.f32.mrf.mxu1  ;;  %3981 = vmatprep.subr.bf16.mxu0 %v5553_v9  ;;  %4021 = vmatpush1.bf16.msra.mxu1 %v5596_v11  ;;  %v5629_v9 = vld [vmem:[#allocation15 + $0x1c0] ss:$8 sps:$4 sm:$0xff]  }
 0x4c5   : > { %4022 = vmatprep.subr.bf16.mxu1 %v5601_v29 }
 0x4c6   : > { %v3285_v6 = vpop.f32.mrf.mxu0  ;;  %v3326_v39 = vpop.f32.mrf.mxu1 }
 0x4c7   : > { %3982 = vmatpush1.bf16.msra.mxu0 %v5551_v37  ;;  %v5634_v37 = vld [vmem:[#allocation15 + $0x1b4] ss:$8 sps:$4 sm:$0xff]   ;;  %v5590_v6 = vld [vmem:[#allocation15 + $0x90] ss:$8 sps:$4 sm:$0xff]   ;;  %v5595_v39 = vld [vmem:[#allocation15 + $0x84] ss:$8 sps:$4 sm:$0xff]  }
 0x4c8   : > { %v3286_v23 = vpop.f32.mrf.mxu0  ;;  %v3327_v59 = vpop.f32.mrf.mxu1  ;;  %3983 = vmatprep.subr.bf16.mxu0 %v5556_v18  ;;  %4023 = vmatpush1.bf16.msra.mxu1 %v5599_v31  ;;  %v6463_v18 = vld [vmem:[%s6544_s8] sm:$0xf]  ;;  %v5637_v31 = vld [vmem:[#allocation15 + $0x1a4] ss:$8 sps:$4 sm:$0xff]  }
 0x4c9   : > { %4024 = vmatprep.subr.bf16.mxu1 %v5604_v8  ;;  %v3230_v23 = vrot.slane %v6463_v18, %v6348_v0  ;;  %v3234_v59 = vrot.slane %v6463_v18, %v6352_v2 }
 0x4cb   : > { %3984 = vmatpush1.bf16.msra.mxu0 %v5554_v22  ;;  %v5632_v22 = vld [vmem:[#allocation15 + $0x1b0] ss:$8 sps:$4 sm:$0xff]   ;;  %v3282_v11 = vadd.f32 %v6451_v36, %v3230_v23  ;;  %v3284_v25 = vadd.f32 %v6456_v21, %v3234_v59  ;;  %v5676_v23 = vld [vmem:[#allocation17 + $0xd4] ss:$8 sps:$4 sm:$0xff]   ;;  %v3238_v59 = vrot.slane %v6463_v18, %v6374_v14 }
 0x4cc   : > { %3985 = vmatprep.subr.bf16.mxu0 %v5559_v32  ;;  %4025 = vmatpush1.bf16.msra.mxu1 %v5602_v28  ;;  %v5593_v32 = vld [vmem:[#allocation15 + $0x80] ss:$8 sps:$4 sm:$0xff]   ;;  %v5680_v14 = vld [vmem:[#allocation17 + $0xb0] ss:$8 sps:$4 sm:$0xff]  }
 0x4cd   : > { %4026 = vmatprep.subr.bf16.mxu1 %v5607_v4  ;;  %v3323_v29 = vadd.f32 %v6453_v20, %v3282_v11  ;;  %v3325_v8 = vadd.f32 %v6458_v34, %v3284_v25  ;;  %v5643_v34 = vld [vmem:[#allocation15 + $0x184] ss:$8 sps:$4 sm:$0xff]   ;;  %v5674_v11 = vld [vmem:[#allocation17 + $0xd0] ss:$8 sps:$4 sm:$0xff]  }
 0x4ce   : > { %v5679_v25 = vld [vmem:[#allocation17 + $0xc4] ss:$8 sps:$4 sm:$0xff]  }
 0x4cf   : > { %3986 = vmatpush1.bf16.msra.mxu0 %v5557_v61 }
 0x4d0   : > { %3987 = vmatprep.subr.bf16.mxu0 %v5562_v30  ;;  %4027 = vmatpush1.bf16.msra.mxu1 %v5605_v41 }
 0x4d1   : > { %4028 = vmatprep.subr.bf16.mxu1 %v5610_v43  ;;  %v5640_v43 = vld [vmem:[#allocation15 + $0x194] ss:$8 sps:$4 sm:$0xff]  }
 0x4d3   : > { %3988 = vmatpush1.bf16.msra.mxu0 %v5560_v27 }
 0x4d4   : > { %3989 = vmatprep.subr.bf16.mxu0 %v5565_v33  ;;  %4029 = vmatpush1.bf16.msra.mxu1 %v5608_v47  ;;  %v5635_v33 = vld [vmem:[#allocation15 + $0x1a0] ss:$8 sps:$4 sm:$0xff]  }
 0x4d5   : > { %4030 = vmatprep.subr.bf16.mxu1 %v5613_v42 }
 0x4d7   : > { %3990 = vmatpush1.bf16.msra.mxu0 %v5563_v38 }
 0x4d8   : > { %3991 = vmatprep.subr.bf16.mxu0 %v5568_v40  ;;  %4031 = vmatpush1.bf16.msra.mxu1 %v5611_v50 }
 0x4d9   : > { %4032 = vmatprep.subr.bf16.mxu1 %v5616_v51 }
 0x4db   : > { %3992 = vmatpush1.bf16.msra.mxu0 %v5566_v44  ;;  %v5638_v44 = vld [vmem:[#allocation15 + $0x190] ss:$8 sps:$4 sm:$0xff]  }
 0x4dc   : > { %3993 = vmatprep.subr.bf16.mxu0 %v5571_v46  ;;  %4033 = vmatpush1.bf16.msra.mxu1 %v5614_v58 }
 0x4dd   : > { %4034 = vmatprep.subr.bf16.mxu1 %v5619_v62 }
 0x4df   : > { %3994 = vmatpush1.bf16.msra.mxu0 %v5569_v48 }
 0x4e0   : > { %3995 = vmatprep.subr.bf16.mxu0 %v5574_v49  ;;  %4035 = vmatpush1.bf16.msra.mxu1 %v5617_v60  ;;  %v5641_v49 = vld [vmem:[#allocation15 + $0x180] ss:$8 sps:$4 sm:$0xff]  }
 0x4e1   : > { %4036 = vmatprep.subr.bf16.mxu1 %v5622_v1  ;;  %v5644_v1 = vld [vmem:[#allocation17 + $0x70] ss:$8 sps:$4 sm:$0xff]  }
 0x4e3   : > { %3996 = vmatpush2.bf16.msra.mxu0 %v5572_v45 }
 0x4e4   : > { %3997 = vmatprep.subr.bf16.mxu0 %v5577_v54  ;;  %4037 = vmatpush2.bf16.msra.mxu1 %v5620_v53  ;;  %v5647_v53 = vld [vmem:[#allocation17 + $0x60] ss:$8 sps:$4 sm:$0xff]  }
 0x4e5   : > { %4038 = vmatprep.subr.bf16.mxu1 %v5625_v15  ;;  %v5652_v15 = vld [vmem:[#allocation17 + $0x54] ss:$8 sps:$4 sm:$0xff]  }
 0x4e7   : > { %3998 = vmatpush2.bf16.msra.mxu0 %v5575_v63 }
 0x4e8   : > { %3999 = vmatprep.subr.bf16.mxu0 %v5580_v10  ;;  %4039 = vmatpush2.bf16.msra.mxu1 %v5623_v5  ;;  %v5653_v5 = vld [vmem:[#allocation17 + $0x40] ss:$8 sps:$4 sm:$0xff]  }
 0x4e9   : > { %4040 = vmatprep.subr.bf16.mxu1 %v5628_v24  ;;  %v5658_v24 = vld [vmem:[#allocation17 + $0x34] ss:$8 sps:$4 sm:$0xff]  }
 0x4eb   : > { %4000 = vmatpush2.bf16.msra.mxu0 %v5578_v26  ;;  %v5646_v26 = vld [vmem:[#allocation17 + $0x74] ss:$8 sps:$4 sm:$0xff]  }
 0x4ec   : > { %4001 = vmatprep.subr.bf16.mxu0 %v5583_v7  ;;  %4041 = vmatpush2.bf16.msra.mxu1 %v5626_v19  ;;  %v5649_v7 = vld [vmem:[#allocation17 + $0x64] ss:$8 sps:$4 sm:$0xff]   ;;  %v5659_v19 = vld [vmem:[#allocation17 + $0x20] ss:$8 sps:$4 sm:$0xff]  }
 0x4ed   : > { %4042 = vmatprep.subr.bf16.mxu1 %v5631_v52  ;;  %v5664_v52 = vld [vmem:[#allocation17 + $0x14] ss:$8 sps:$4 sm:$0xff]  }
 0x4ef   : > { %4002 = vmatpush2.bf16.msra.mxu0 %v5581_v57  ;;  %v5650_v57 = vld [vmem:[#allocation17 + $0x50] ss:$8 sps:$4 sm:$0xff]  }
 0x4f0   : > { %4003 = vmatprep.subr.bf16.mxu0 %v5586_v3  ;;  %4043 = vmatpush2.bf16.msra.mxu1 %v5629_v9  ;;  %v5655_v3 = vld [vmem:[#allocation17 + $0x44] ss:$8 sps:$4 sm:$0xff]   ;;  %v5665_v9 = vld [vmem:[#allocation17] ss:$8 sps:$4 sm:$0xff]  }
 0x4f1   : > { %4044 = vmatprep.subr.bf16.mxu1 %v5634_v37  ;;  %v5670_v37 = vld [vmem:[#allocation17 + $0xf4] ss:$8 sps:$4 sm:$0xff]  }
 0x4f3   : > { %4004 = vmatpush2.bf16.msra.mxu0 %v5584_v17  ;;  %v5656_v17 = vld [vmem:[#allocation17 + $0x30] ss:$8 sps:$4 sm:$0xff]  }
 0x4f4   : > { %4005 = vmatprep.subr.bf16.mxu0 %v5589_v35  ;;  %4045 = vmatpush2.bf16.msra.mxu1 %v5632_v22  ;;  %v5661_v35 = vld [vmem:[#allocation17 + $0x24] ss:$8 sps:$4 sm:$0xff]   ;;  %v5671_v22 = vld [vmem:[#allocation17 + $0xe0] ss:$8 sps:$4 sm:$0xff]  }
 0x4f5   : > { %4046 = vmatprep.subr.bf16.mxu1 %v5637_v31  ;;  %v5682_v31 = vld [vmem:[#allocation17 + $0xb4] ss:$8 sps:$4 sm:$0xff]  }
 0x4f7   : > { %4006 = vmatpush2.bf16.msra.mxu0 %v5587_v13  ;;  %v5662_v13 = vld [vmem:[#allocation17 + $0x10] ss:$8 sps:$4 sm:$0xff]  }
 0x4f8   : > { %4007 = vmatprep.subr.bf16.mxu0 %v5592_v55  ;;  %4047 = vmatpush2.bf16.msra.mxu1 %v5635_v33  ;;  %v5667_v55 = vld [vmem:[#allocation17 + $0x4] ss:$8 sps:$4 sm:$0xff]  }
 0x4f9   : > { %4048 = vmatprep.subr.bf16.mxu1 %v5640_v43 }
 0x4fb   : > { %4008 = vmatpush2.bf16.msra.mxu0 %v5590_v6  ;;  %v5668_v6 = vld [vmem:[#allocation17 + $0xf0] ss:$8 sps:$4 sm:$0xff]  }
 0x4fc   : > { %4009 = vmatprep.subr.bf16.mxu0 %v5595_v39  ;;  %4049 = vmatpush2.bf16.msra.mxu1 %v5638_v44  ;;  %v5673_v39 = vld [vmem:[#allocation17 + $0xe4] ss:$8 sps:$4 sm:$0xff]   ;;  %v5683_v44 = vld [vmem:[#allocation17 + $0xa0] ss:$8 sps:$4 sm:$0xff]  }
 0x4fd   : > { %4050 = vmatprep.subr.bf16.mxu1 %v5643_v34 }
 0x4ff   : > { %4010 = vmatpush2.bf16.msra.mxu0 %v5593_v32  ;;  %v3242_v32 = vrot.slane %v6463_v18, %v6371_v12  ;;  %v5685_v12 = vld [vmem:[#allocation17 + $0xa4] ss:$8 sps:$4 sm:$0xff]  }
 0x500   : > { %4051 = vmatpush2.bf16.msra.mxu1 %v5641_v49  ;;  %4269 = vmatprep.subr.bf16.mxu0 %v5646_v26 }
 0x502   : > { %v3363_v61 = vpop.f32.mrf.mxu0  ;;  %v3404_v30 = vpop.f32.mrf.mxu1 }
 0x503   : > { %v3364_v27 = vadd.f32 %v3363_v61, %v3323_v29 }
 0x504   : > { %v3365_v28 = vpop.f32.mrf.mxu0  ;;  %v3406_v4 = vpop.f32.mrf.mxu1 }
 0x505   : > { %v3405_v38 = vadd.f32 %v3404_v30, %v3364_v27  ;;  %v3366_v40 = vadd.f32 %v3365_v28, %v3325_v8  ;;  %v5677_v30 = vld [vmem:[#allocation17 + $0xc0] ss:$8 sps:$4 sm:$0xff]  }
 0x506   : > { %v3367_v41 = vpop.f32.mrf.mxu0  ;;  %v3408_v36 = vpop.f32.mrf.mxu1 }
 0x507   : > { %v3407_v21 = vadd.f32 %v3406_v4, %v3366_v40  ;;  %v3575_v46 = vmax.f32 %v3405_v38, 0.0 }
 0x508   : > { %v3368_v20 = vpop.f32.mrf.mxu0  ;;  %v3409_v47 = vpop.f32.mrf.mxu1 }
 0x509   : > { %v3576_v42 = vmax.f32 %v3407_v21, 0.0  ;;  %v3579_v50 = vpack.c.bf16 %v3575_v46, %v3575_v46 }
 0x50b   : > { %v3580_v48 = vpack.c.bf16 %v3576_v42, %v3576_v42 }
 0x50d   : > { %4011 = vmatprep.mubr.bf16.mxu0 %v3580_v48 }
 0x50e   : > { %4012 = vmatmul.mubr.bf16.vlgmr.msra.gmra.mxu0 %v3579_v50 }
 0x50f   : > { %4270 = vmatpush1.bf16.msra.mxu0 %v5644_v1 }
 0x510   : > { %4271 = vmatprep.subr.bf16.mxu0 %v5649_v7 }
 0x513   : > { %4272 = vmatpush1.bf16.msra.mxu0 %v5647_v53 }
 0x514   : > { %4273 = vmatprep.subr.bf16.mxu0 %v5652_v15 }
 0x517   : > { %4274 = vmatpush1.bf16.msra.mxu0 %v5650_v57 }
 0x518   : > { %4275 = vmatprep.subr.bf16.mxu0 %v5655_v3 }
 0x51b   : > { %4276 = vmatpush1.bf16.msra.mxu0 %v5653_v5 }
 0x51c   : > { %4277 = vmatprep.subr.bf16.mxu0 %v5658_v24 }
 0x51f   : > { %4278 = vmatpush1.bf16.msra.mxu0 %v5656_v17 }
 0x520   : > { %4279 = vmatprep.subr.bf16.mxu0 %v5661_v35 }
 0x523   : > { %4280 = vmatpush1.bf16.msra.mxu0 %v5659_v19 }
 0x524   : > { %4281 = vmatprep.subr.bf16.mxu0 %v5664_v52 }
 0x527   : > { %4282 = vmatpush1.bf16.msra.mxu0 %v5662_v13  ;;  %v4097_v13 = vld [vmem:[%s6591_s19] sm:$0x3]  ;;  %s5932_s19 = sshll.u32 %s6045_s16, 4  ;;  %s5933_s19 = int_to_ptr.vmem [resolvable:$false] %s5932_s19 }
 0x528   : > { %4283 = vmatprep.subr.bf16.mxu0 %v5667_v55  ;;  %v4262_v55 = vrot.slane %v4097_v13, %v6348_v0  ;;  %s5934_s28 = scalar_lea.vmem %s5933_s19, 64  ;;  %p5935_p4 = scmp.lt.s32.totalorder %s4363_s2, %s5933_s19 }
 0x529   : > { %p5936_p3 = scmp.lt.s32.totalorder %s5934_s28, %s5928_s26 }
 0x52b   : > { %4284 = vmatpush1.bf16.msra.mxu0 %v5665_v9  ;;  %v4310_v9 = vld [vmem:[%s6593_s13] sm:$0x3]  ;;  %p5937_p8 = por %p5936_p3, %p5935_p4 }
 0x52c   : > { %4285 = vmatprep.subr.bf16.mxu0 %v5670_v37  ;;  %v4266_v37 = vrot.slane %v4097_v13, %v6352_v2 }
 0x52d   : > { %p5938_p6 = pnand %p5937_p8, %p5931_p7 }
 0x52f   : > { %4286 = vmatpush2.bf16.msra.mxu0 %v5668_v6 }
 0x530   : > { %4287 = vmatprep.subr.bf16.mxu0 %v5673_v39 }
 0x533   : > { %4288 = vmatpush2.bf16.msra.mxu0 %v5671_v22  ;;  %v4315_v22 = vrot.slane %v4310_v9, %v6348_v0 }
 0x534   : > { %4289 = vmatprep.subr.bf16.mxu0 %v5676_v23  ;;  %v4319_v23 = vrot.slane %v4310_v9, %v6352_v2 }
 0x537   : > { %4290 = vmatpush2.bf16.msra.mxu0 %v5674_v11 }
 0x538   : > { %4291 = vmatprep.subr.bf16.mxu0 %v5679_v25 }
 0x53b   : > { %4292 = vmatpush2.bf16.msra.mxu0 %v5677_v30 }
 0x53c   : > { %4293 = vmatprep.subr.bf16.mxu0 %v5682_v31 }
 0x53f   : > { %4294 = vmatpush2.bf16.msra.mxu0 %v5680_v14 }
 0x540   : > { %4295 = vmatprep.subr.bf16.mxu0 %v5685_v12 }
 0x542   : > { %v3445_v51 = vpop.f32.mrf.mxu0 }
 0x543   : > { %v3486_v45 = vpop.f32.mrf.mxu1  ;;  %v3446_v29 = vadd.f32 %v3445_v51, %v3238_v59  ;;  %4296 = vmatpush2.bf16.msra.mxu0 %v5683_v44  ;;  %v5688_v51 = vld [vmem:[#allocation17 + $0x94] ss:$8 sps:$4 sm:$0xff]  }
 0x544   : > { %v3447_v54 = vpop.f32.mrf.mxu0  ;;  %4297 = vmatprep.subr.bf16.mxu0 %v5688_v51 }
 0x545   : > { %v3488_v58 = vpop.f32.mrf.mxu1  ;;  %v3448_v61 = vadd.f32 %v3447_v54, %v3242_v32  ;;  %v3487_v8 = vadd.f32 %v3486_v45, %v3446_v29  ;;  %v5686_v45 = vld [vmem:[#allocation17 + $0x90] ss:$8 sps:$4 sm:$0xff]  }
 0x546   : > { %v3449_v62 = vpop.f32.mrf.mxu0 }
 0x547   : > { %v3490_v63 = vpop.f32.mrf.mxu1  ;;  %v3489_v33 = vadd.f32 %v3488_v58, %v3448_v61  ;;  %4298 = vmatpush2.bf16.msra.mxu0 %v5686_v45  ;;  %v5691_v62 = vld [vmem:[#allocation17 + $0x84] ss:$8 sps:$4 sm:$0xff]  }
 0x548   : > { %v3450_v10 = vpop.f32.mrf.mxu0  ;;  %v5689_v63 = vld [vmem:[#allocation17 + $0x80] ss:$8 sps:$4 sm:$0xff]   ;;  %4299 = vmatprep.subr.bf16.mxu0 %v5691_v62 }
 0x549   : > { %v3491_v60 = vpop.f32.mrf.mxu1  ;;  %v3647_v10 = vld [vmem:[%s6546_s10] sm:$0x3] }
 0x54a   : > { %v3972_v60 = vrot.slane %v3647_v10, %v6348_v0  ;;  %v3976_v1 = vrot.slane %v3647_v10, %v6352_v2 }
 0x54b   : > { %4300 = vmatpush2.bf16.msra.mxu0 %v5689_v63 }
 0x582   : > { %v3527_v27 = vpop.f32.mrf.mxu0 }
 0x583   : > { %v3528_v28 = vadd.f32 %v3527_v27, %v3487_v8  ;;  %v3568_v4 = vpop.f32.mrf.mxu1 }
 0x584   : > { %v3529_v38 = vpop.f32.mrf.mxu0 }
 0x585   : > { %v3569_v18 = vadd.f32 %v3568_v4, %v3528_v28  ;;  %v3530_v40 = vadd.f32 %v3529_v38, %v3489_v33  ;;  %v3570_v41 = vpop.f32.mrf.mxu1 }
 0x586   : > { %v3531_v36 = vpop.f32.mrf.mxu0 }
 0x587   : > { %v3571_v43 = vadd.f32 %v3570_v41, %v3530_v40  ;;  %v3572_v21 = vpop.f32.mrf.mxu1  ;;  %v3577_v46 = vmax.f32 %v3569_v18, 0.0 }
 0x588   : > { %v3532_v20 = vpop.f32.mrf.mxu0 }
 0x589   : > { %v3578_v47 = vmax.f32 %v3571_v43, 0.0  ;;  %v3573_v42 = vpop.f32.mrf.mxu1  ;;  %v3581_v48 = vpack.c.bf16 %v3577_v46, %v3577_v46 }
 0x58b   : > { %v3582_v34 = vpack.c.bf16 %v3578_v47, %v3578_v47 }
 0x58d   : > { %4052 = vmatprep.mubr.bf16.mxu1 %v3582_v34 }
 0x58e   : > { %4053 = vmatmul.mubr.bf16.vlgmr.msra.gmra.mxu1 %v3581_v48 }
 0x5ce   : > { %v4013_v49 = vpop.f32.mrf.mxu0 }
 0x5cf   : > { %v4014_v26 = vadd.f32 %v4013_v49, %v3972_v60 }
 0x5d0   : > { %v4015_v50 = vpop.f32.mrf.mxu0 }
 0x5d1   : > { %v4016_v53 = vadd.f32 %v4015_v50, %v3976_v1 }
 0x5d2   : > { %v4017_v54 = vpop.f32.mrf.mxu0 }
 0x5d4   : > { %v4018_v58 = vpop.f32.mrf.mxu0 }
 0x64e   : > { %v4054_v7 = vpop.f32.mrf.mxu1 }
 0x64f   : > { %v4055_v15 = vadd.f32 %v4054_v7, %v4014_v26 }
 0x650   : > { %v4056_v57 = vpop.f32.mrf.mxu1 }
 0x651   : > { %v4057_v3 = vadd.f32 %v4056_v57, %v4016_v53  ;;  %v4061_v5 = vmax.f32 %v4055_v15, 0.0 }
 0x652   : > { %v4058_v24 = vpop.f32.mrf.mxu1 }
 0x653   : > { %v4062_v17 = vmax.f32 %v4057_v3, 0.0  ;;  %v4063_v52 = vpack.c.bf16 %v4061_v5, %v4061_v5 }
 0x654   : > { %v4059_v35 = vpop.f32.mrf.mxu1 }
 0x655   : > { %v4064_v19 = vpack.c.bf16 %v4062_v17, %v4062_v17 }
 0x657   : > { %4301 = vmatprep.mubr.bf16.mxu0 %v4064_v19 }
 0x658   : > { %4302 = vmatmul.mubr.bf16.vlgmr.msra.gmra.mxu0 %v4063_v52 }
 0x718   : > { %v4303_v6 = vpop.f32.mrf.mxu0 }
 0x719   : > { %v4304_v39 = vadd.f32 %v4303_v6, %v4262_v55 }
 0x71a   : > { %v4305_v59 = vpop.f32.mrf.mxu0 }
 0x71b   : > { %v4306_v32 = vadd.f32 %v4305_v59, %v4266_v37  ;;  %v4322_v25 = vadd.f32 %v4315_v22, %v4304_v39 }
 0x71c   : > { %v4307_v11 = vpop.f32.mrf.mxu0 }
 0x71d   : > { %v4323_v29 = vadd.f32 %v4319_v23, %v4306_v32 }
 0x71e   : > { %v4308_v61 = vpop.f32.mrf.mxu0 }
 0x71f   : > { %v4326_v30 = vcombine.low %v4322_v25, %v4323_v29 }
 0x721   : > { %v4333_v31 = vrot.slane %v4326_v30, %v6390_v16 }
 0x723   : > { %v4340_v0 = vrot.slane %v4333_v31, %v6390_v16 }
 0x725   : > { %4346 = vst.msk [vmem:[%s612_s23] sm:$0x3] %vm4344_vm2, %v4340_v0 }
 0x726   : > { %5941 = shalt.err (!%p5938_p6)
}
 0x727   : > { %s5942_s22 = scalar_lea.hbm %s4360_s21, 32  ;;  %s5946_s13 = scalar_lea.hbm %s6594_s20, 64 }
 0x728   : > { %p5943_p9 = scmp.ne.s32.totalorder %s4360_s21, %s5942_s22  ;;  %p5947_p12 = scmp.lt.s32.totalorder %s4360_s21, %s6594_s20 }
 0x729   : > { %p5948_p0 = scmp.lt.s32.totalorder %s5946_s13, %s5942_s22 }
 0x72a   : > { %p5944_p11 = pnand %p5943_p9, %p6265_p10 }
 0x72b   : > { %p5949_p1 = por %p5948_p0, %p5947_p12 }
 0x72c   : > { %p5945_p5 = pneg %p5944_p11 }
 0x72e   : > { %p5950_p2 = pnand %p5949_p1, %p5945_p5 }
 0x730   : > { %5953 = shalt.err (!%p5950_p2)
}
 0x731   : > { %5039 = dma.vmem_to_hbm [thread:$0]  (%p6265_p10), %s4363_s2, 32, %s4360_s21, %s4348_s1  }
 0x732 PF: > { %s4374_s23 = sand.u32 1, %s6004_s29   ;;  %p6595_p7 = scmp.ge.s32.totalorder %s6024_s18, 2 }
 0x733   : > { %s4375_s4 = scalar_lea.sflag [#allocation5], %s4374_s23 }
 0x734   : > { %p5071_p4 = pnand %p6595_p7, %p6272_p13 }
 0x736   : > { %p5072_p3 = pneg %p5071_p4 }
 0x738   : > { %5999 = dma.done.wait (%p5072_p3), %s4375_s4, 32  }
 0x739   : > { %6001 = vsyncadd (%p5072_p3), %s4375_s4, 4294967264  ;;  %s34_s18 = sadd.s32 1, %s6024_s18   ;;  %s6596_s29 = smov %s6008_s30 }
 0x73a   : > { %p31_p8 = scmp.ge.s32.totalorder %s34_s18, 4   ;;  %s6597_s30 = smov %s6012_s15 }
 0x73b   : > { %s6598_s15 = smov %s6270_s27  ;;  %s6599_s16 = smov %s6020_s17 }
 0x73c   : > { %s6600_s17 = smov %s6602_s24  ;;  %33 = sbr.rel (!%p31_p8) target bundleno = 21 (0x15), region = 161 }
 0x741   :  { %4380 = vsyncpa [#allocation4], 1 }
 0x742   :  { %4382 = vsyncpa [#allocation4 + $0x1], 1 }
 0x743   :  { %4383 = vsyncpa [#allocation7], 1 }
 0x744   :  { %4384 = vsyncpa [#allocation10], 1 }
 0x745   :  { %4385 = vsyncpa [#allocation13], 1 }
 0x746   :  { %4386 = vsyncpa [#allocation16], 1 }
 0x747   :  { %4387 = vsyncpa [#allocation5], 1 }
 0x748   :  { %4389 = vsyncpa [#allocation5 + $0x1], 1 }

</bundles_post_ra>
